<compile_context>
chip_gen: v5e
topology: v5e:2x2
jax: 0.10.0
libtpu: 0.0.40
codegen_flags: <defaults>
</compile_context>

<pallas_src>
import functools
import math

import jax
import jax.numpy as jnp
from jax.experimental import pallas as pl
from jax.experimental.pallas import tpu as pltpu

# ----------------------------- model dims ----------------------------------
B = 2            # batch
C_IN = 3         # image channels
H = W = 16       # spatial
N_SLICES = 4     # CT slices (last axis of `images`)
V_DIM = 32       # visual_embedding_dim
HID = 32         # decoder hidden size
N_HEADS = 4
HEAD = HID // N_HEADS
FFN = 64
VOCAB = 64
T = 8            # text sequence length
NEG = -1e9


# ----------------------------- encoder kernel -------------------------------
def encoder_kernel(pat_ref, cw_ref, cb_ref, pw_ref, pb_ref, feat_ref, mask_ref):
    """One CT slice per grid step: conv(im2col matmul)+ReLU -> global avg pool
    -> visual projection -> feature + |.|-sum mask."""
    pat = pat_ref[0]                                           # (H*W, 9*C)
    y = jnp.dot(pat, cw_ref[...], preferred_element_type=jnp.float32)
    y = jnp.maximum(y + cb_ref[...], 0.0)                      # conv + bias + ReLU
    pooled = jnp.mean(y, axis=0, keepdims=True)                # (1, V_DIM) GAP
    feat = jnp.dot(pooled, pw_ref[...],
                   preferred_element_type=jnp.float32) + pb_ref[...]   # (1, HID)
    feat_ref[0] = feat.astype(feat_ref.dtype)
    mask_ref[0] = (jnp.sum(jnp.abs(feat), axis=-1, keepdims=True) != 0.0
                   ).astype(mask_ref.dtype)


def encode(params, images, images_mask=None):
    """images: (B, C, H, W, S) -> features (B, S, HID), feature_mask (B, S)."""
    Bz = images.shape[0]
    S = images.shape[-1]
    BS = Bz * S
    HWp = H * W
    K9 = 9 * C_IN

    # Batch all slices: (B, C, H, W, S) -> (B*S, H, W, C), then im2col patches
    # ordered (kh, kw, c) to match the OIHW -> (9*C, V_DIM) weight reshape.
    x = jnp.transpose(images, (0, 4, 2, 3, 1)).reshape(BS, H, W, C_IN)
    xp = jnp.pad(x, ((0, 0), (1, 1), (1, 1), (0, 0)))
    cols = [xp[:, kh:kh + H, kw:kw + W, :] for kh in range(3) for kw in range(3)]
    pat = jnp.concatenate(cols, axis=-1).reshape(BS, HWp, K9)
    conv_w = jnp.transpose(params["conv_w"], (2, 3, 1, 0)).reshape(K9, V_DIM)

    feat, maskf = pl.pallas_call(
        encoder_kernel,
        out_shape=(jax.ShapeDtypeStruct((BS, 1, HID), jnp.float32),
                   jax.ShapeDtypeStruct((BS, 1, 1), jnp.float32)),
        grid=(BS,),
        in_specs=[
            pl.BlockSpec((1, HWp, K9), lambda i: (i, 0, 0)),
            pl.BlockSpec((K9, V_DIM), lambda i: (0, 0)),
            pl.BlockSpec((1, V_DIM), lambda i: (0, 0)),
            pl.BlockSpec((V_DIM, HID), lambda i: (0, 0)),
            pl.BlockSpec((1, HID), lambda i: (0, 0)),
        ],
        out_specs=(pl.BlockSpec((1, 1, HID), lambda i: (i, 0, 0)),
                   pl.BlockSpec((1, 1, 1), lambda i: (i, 0, 0))),
        compiler_params=pltpu.CompilerParams(
            dimension_semantics=("parallel",)),
    )(pat.astype(jnp.float32), conv_w.astype(jnp.float32),
      params["conv_b"].reshape(1, V_DIM), params["proj_w"],
      params["proj_b"].reshape(1, HID))

    features = feat.reshape(Bz, S, HID)
    feature_mask = maskf.reshape(Bz, S) > 0.0
    return features, feature_mask


# ----------------------------- decoder kernel -------------------------------
def decoder_kernel(x_ref, sa_mask_ref, enc_ref, ca_mask_ref, ln_ref,
                   sa_wqkv_ref, sa_bqkv_ref, sa_wo_ref, sa_bo_ref,
                   ca_wq_ref, ca_bq_ref, ca_wkv_ref, ca_bkv_ref,
                   ca_wo_ref, ca_bo_ref,
                   ffn_w1_ref, ffn_b1_ref, ffn_w2_ref, ffn_b2_ref,
                   lm_w_ref, lm_b_ref, out_ref):
    """Whole decoder layer + LM head for one batch element, fully VMEM-resident."""
    x = x_ref[0]                 # (T, HID) token+pos embeddings
    sa_mask = sa_mask_ref[0]     # (T, T)   additive causal+padding mask
    enc = enc_ref[0]             # (S, HID) encoded CT slices
    ca_mask = ca_mask_ref[0]     # (T, S)   additive cross-attn mask
    ln = ln_ref[...]             # (8, HID) [g, b] x 4 layernorms
    scale = 1.0 / math.sqrt(HEAD)

    def layer_norm(y, row):
        g = ln[row:row + 1]
        b = ln[row + 1:row + 2]
        mu = jnp.mean(y, axis=-1, keepdims=True)
        var = jnp.mean((y - mu) ** 2, axis=-1, keepdims=True)
        return (y - mu) * jax.lax.rsqrt(var + 1e-5) * g + b

    def proj(a, w_ref, b_ref):
        return jnp.dot(a, w_ref[...],
                       preferred_element_type=jnp.float32) + b_ref[...]

    def mha(q, k, v, add_mask, wo, bo):
        # Per-head attention with the output projection folded into the head
        # loop (sum over per-head slabs of W_o == concat(heads) @ W_o).
        acc = None
        for h in range(N_HEADS):
            sl = slice(h * HEAD, (h + 1) * HEAD)
            qh, kh, vh = q[:, sl], k[:, sl], v[:, sl]
            s = jax.lax.dot_general(qh, kh, (((1,), (1,)), ((), ())),
                                    preferred_element_type=jnp.float32)
            s = s * scale + add_mask
            s = s - jnp.max(s, axis=-1, keepdims=True)
            p = jnp.exp(s)
            p = p * pl.reciprocal(jnp.sum(p, axis=-1, keepdims=True),
                                  approx=True)
            oh = jnp.dot(p, vh, preferred_element_type=jnp.float32)
            c = jnp.dot(oh, wo[sl, :], preferred_element_type=jnp.float32)
            acc = c if acc is None else acc + c
        return acc + bo

    h = layer_norm(x, 0)                                      # embedding LN

    # causal self-attention (fused QKV projection, lane width 96)
    qkv = proj(h, sa_wqkv_ref, sa_bqkv_ref)                   # (T, 3*HID)
    attn = mha(qkv[:, :HID], qkv[:, HID:2 * HID], qkv[:, 2 * HID:],
               sa_mask, sa_wo_ref[...], sa_bo_ref[...])
    h = layer_norm(h + attn, 2)

    # cross-attention over encoded CT slices (fused KV projection)
    q = proj(h, ca_wq_ref, ca_bq_ref)                         # (T, HID)
    kv = proj(enc, ca_wkv_ref, ca_bkv_ref)                    # (S, 2*HID)
    cross = mha(q, kv[:, :HID], kv[:, HID:], ca_mask,
                ca_wo_ref[...], ca_bo_ref[...])
    h = layer_norm(h + cross, 4)

    # feed-forward
    f = jnp.maximum(proj(h, ffn_w1_ref, ffn_b1_ref), 0.0)
    f = proj(f, ffn_w2_ref, ffn_b2_ref)
    h = layer_norm(h + f, 6)

    # LM head
    out_ref[0] = proj(h, lm_w_ref, lm_b_ref).astype(out_ref.dtype)


def decoder_forward(params, input_ids, attention_mask, enc_out, enc_mask):
    Bz, Tz = input_ids.shape
    S = enc_out.shape[1]

    # Embedding lookup + positional embedding (gather stays in plain JAX).
    x = params["tok_emb"][input_ids] + params["pos_emb"][None, :Tz, :]

    # Additive masks.
    causal = jnp.tril(jnp.ones((Tz, Tz), jnp.float32))
    keep = causal[None, :, :] * attention_mask.astype(jnp.float32)[:, None, :]
    sa_mask = (1.0 - keep) * NEG                              # (B, T, T)
    enc_keep = jnp.broadcast_to(
        enc_mask.astype(jnp.float32)[:, None, :], (Bz, Tz, S))
    ca_mask = (1.0 - enc_keep) * NEG                          # (B, T, S)

    # Fused projection weights / packed LN params (built once, tiny).
    sa_wqkv = jnp.concatenate(
        [params["sa_wq"], params["sa_wk"], params["sa_wv"]], axis=1)
    sa_bqkv = jnp.concatenate(
        [params["sa_bq"], params["sa_bk"], params["sa_bv"]]).reshape(1, 3 * HID)
    ca_wkv = jnp.concatenate([params["ca_wk"], params["ca_wv"]], axis=1)
    ca_bkv = jnp.concatenate(
        [params["ca_bk"], params["ca_bv"]]).reshape(1, 2 * HID)
    ln_pack = jnp.stack([params["emb_ln_g"], params["emb_ln_b"],
                         params["ln1_g"], params["ln1_b"],
                         params["ln2_g"], params["ln2_b"],
                         params["ln3_g"], params["ln3_b"]])   # (8, HID)

    logits = pl.pallas_call(
        decoder_kernel,
        out_shape=jax.ShapeDtypeStruct((Bz, Tz, VOCAB), jnp.float32),
        grid=(Bz,),
        in_specs=[
            pl.BlockSpec((1, Tz, HID), lambda b: (b, 0, 0)),      # x
            pl.BlockSpec((1, Tz, Tz), lambda b: (b, 0, 0)),       # sa_mask
            pl.BlockSpec((1, S, HID), lambda b: (b, 0, 0)),       # enc
            pl.BlockSpec((1, Tz, S), lambda b: (b, 0, 0)),        # ca_mask
            pl.BlockSpec((8, HID), lambda b: (0, 0)),             # ln_pack
            pl.BlockSpec((HID, 3 * HID), lambda b: (0, 0)),       # sa_wqkv
            pl.BlockSpec((1, 3 * HID), lambda b: (0, 0)),         # sa_bqkv
            pl.BlockSpec((HID, HID), lambda b: (0, 0)),           # sa_wo
            pl.BlockSpec((1, HID), lambda b: (0, 0)),             # sa_bo
            pl.BlockSpec((HID, HID), lambda b: (0, 0)),           # ca_wq
            pl.BlockSpec((1, HID), lambda b: (0, 0)),             # ca_bq
            pl.BlockSpec((HID, 2 * HID), lambda b: (0, 0)),       # ca_wkv
            pl.BlockSpec((1, 2 * HID), lambda b: (0, 0)),         # ca_bkv
            pl.BlockSpec((HID, HID), lambda b: (0, 0)),           # ca_wo
            pl.BlockSpec((1, HID), lambda b: (0, 0)),             # ca_bo
            pl.BlockSpec((HID, FFN), lambda b: (0, 0)),           # ffn_w1
            pl.BlockSpec((1, FFN), lambda b: (0, 0)),             # ffn_b1
            pl.BlockSpec((FFN, HID), lambda b: (0, 0)),           # ffn_w2
            pl.BlockSpec((1, HID), lambda b: (0, 0)),             # ffn_b2
            pl.BlockSpec((HID, VOCAB), lambda b: (0, 0)),         # lm_w
            pl.BlockSpec((1, VOCAB), lambda b: (0, 0)),           # lm_b
        ],
        out_specs=pl.BlockSpec((1, Tz, VOCAB), lambda b: (b, 0, 0)),
        compiler_params=pltpu.CompilerParams(
            dimension_semantics=("parallel",)),
    )(x.astype(jnp.float32), sa_mask, enc_out.astype(jnp.float32), ca_mask,
      ln_pack, sa_wqkv, sa_bqkv, params["sa_wo"],
      params["sa_bo"].reshape(1, HID), params["ca_wq"],
      params["ca_bq"].reshape(1, HID), ca_wkv, ca_bkv, params["ca_wo"],
      params["ca_bo"].reshape(1, HID), params["ffn_w1"],
      params["ffn_b1"].reshape(1, FFN), params["ffn_w2"],
      params["ffn_b2"].reshape(1, HID), params["lm_w"],
      params["lm_b"].reshape(1, VOCAB))
    return logits


def rrg_2d_ct_forward(params, input_ids, attention_mask, images,
                      images_mask=None, encoder_outputs=None,
                      encoder_attention_mask=None):
    # TODO(synk): the original self.dec is a full HuggingFace DecoderModel
    # (multi-layer, config-driven); a single-layer decoder with the same
    # dataflow (causal self-attn + cross-attn + FFN + LM head) is used here.
    if encoder_outputs is None:
        encoder_outputs, encoder_attention_mask = encode(params, images,
                                                         images_mask)
    return decoder_forward(params, input_ids, attention_mask,
                           encoder_outputs, encoder_attention_mask)


# ----------------------------- params ---------------------------------------
def init_params(key):
    ks = iter(jax.random.split(key, 24))

    def nrm(shape, s=0.02):
        return (jax.random.normal(next(ks), shape) * s).astype(jnp.float32)

    p = {}
    p["conv_w"] = nrm((V_DIM, C_IN, 3, 3), 0.1)   # PyTorch OIHW conv weight
    p["conv_b"] = jnp.zeros((V_DIM,), jnp.float32)
    p["proj_w"] = nrm((V_DIM, HID))
    p["proj_b"] = jnp.zeros((HID,), jnp.float32)
    p["tok_emb"] = nrm((VOCAB, HID))
    p["pos_emb"] = nrm((T, HID))
    p["emb_ln_g"] = jnp.ones((HID,), jnp.float32)
    p["emb_ln_b"] = jnp.zeros((HID,), jnp.float32)
    for pre in ("sa", "ca"):
        for nm in ("wq", "wk", "wv", "wo"):
            p[f"{pre}_{nm}"] = nrm((HID, HID))
        for nm in ("bq", "bk", "bv", "bo"):
            p[f"{pre}_{nm}"] = jnp.zeros((HID,), jnp.float32)
    p["ln1_g"] = jnp.ones((HID,), jnp.float32); p["ln1_b"] = jnp.zeros((HID,), jnp.float32)
    p["ln2_g"] = jnp.ones((HID,), jnp.float32); p["ln2_b"] = jnp.zeros((HID,), jnp.float32)
    p["ln3_g"] = jnp.ones((HID,), jnp.float32); p["ln3_b"] = jnp.zeros((HID,), jnp.float32)
    p["ffn_w1"] = nrm((HID, FFN)); p["ffn_b1"] = jnp.zeros((FFN,), jnp.float32)
    p["ffn_w2"] = nrm((FFN, HID)); p["ffn_b2"] = jnp.zeros((HID,), jnp.float32)
    p["lm_w"] = nrm((HID, VOCAB)); p["lm_b"] = jnp.zeros((VOCAB,), jnp.float32)
    return p


# ----------------------------- main ------------------------------------------
if __name__ == "__main__":
    key = jax.random.PRNGKey(0)
    k_param, k_ids, k_img = jax.random.split(key, 3)

    params = init_params(k_param)
    images = jax.random.normal(k_img, (B, C_IN, H, W, N_SLICES), jnp.float32)
    input_ids = jax.random.randint(k_ids, (B, T), 0, VOCAB)
    attention_mask = jnp.ones((B, T), jnp.int32).at[1, -2:].set(0)

    fwd = jax.jit(rrg_2d_ct_forward)
    logits = fwd(params, input_ids, attention_mask, images)
    logits = jax.block_until_ready(logits)

    assert logits.shape == (B, T, VOCAB), logits.shape
    assert bool(jnp.all(jnp.isfinite(logits)))
    print("KERNEL_OK")
</pallas_src>

<mosaic_0001>
module attributes {stable_mosaic.version = 11 : i64} {
  func.func @encoder_kernel(%arg0: i32, %arg1: memref<1x256x27xf32, #tpu.memory_space<vmem>>, %arg2: memref<27x32xf32, #tpu.memory_space<vmem>>, %arg3: memref<1x32xf32, #tpu.memory_space<vmem>>, %arg4: memref<32x32xf32, #tpu.memory_space<vmem>>, %arg5: memref<1x32xf32, #tpu.memory_space<vmem>>, %arg6: memref<1x1x32xf32, #tpu.memory_space<vmem>>, %arg7: memref<1x1x1xf32, #tpu.memory_space<vmem>>) attributes {dimension_semantics = [#tpu.dimension_semantics<parallel>], iteration_bounds = array<i64: 8>, scalar_prefetch = 0 : i64, scratch_operands = 0 : i64, tpu.core_type = #tpu.core_type<tc>, window_params = [{transform_indices = @transform_0, window_bounds = array<i64: 1, 256, 27>}, {pipeline_mode = #tpu.pipeline_mode<synchronous>, transform_indices = @transform_1, window_bounds = array<i64: 27, 32>}, {pipeline_mode = #tpu.pipeline_mode<synchronous>, transform_indices = @transform_2, window_bounds = array<i64: 1, 32>}, {pipeline_mode = #tpu.pipeline_mode<synchronous>, transform_indices = @transform_3, window_bounds = array<i64: 32, 32>}, {pipeline_mode = #tpu.pipeline_mode<synchronous>, transform_indices = @transform_4, window_bounds = array<i64: 1, 32>}, {transform_indices = @transform_5, window_bounds = array<i64: 1, 1, 32>}, {transform_indices = @transform_6, window_bounds = array<i64: 1, 1, 1>}]} {
    %c0 = arith.constant 0 : index
    %c0_0 = arith.constant 0 : index
    %c0_1 = arith.constant 0 : index
    %0 = vector.load %arg1[%c0, %c0_0, %c0_1] : memref<1x256x27xf32, #tpu.memory_space<vmem>>, vector<1x256x27xf32>
    %1 = vector.shape_cast %0 : vector<1x256x27xf32> to vector<256x27xf32>
    %c0_2 = arith.constant 0 : index
    %c0_3 = arith.constant 0 : index
    %2 = vector.load %arg2[%c0_2, %c0_3] : memref<27x32xf32, #tpu.memory_space<vmem>>, vector<27x32xf32>
    %cst = arith.constant dense<0.000000e+00> : vector<256x32xf32>
    %3 = tpu.matmul %1, %2, %cst {dimension_numbers = #tpu.dot_dimension_numbers<[1], [0], [0], [1], [0, 0, 1, 1], [], []>} : vector<256x27xf32>, vector<27x32xf32>, vector<256x32xf32> -> vector<256x32xf32>
    %c0_4 = arith.constant 0 : index
    %c0_5 = arith.constant 0 : index
    %4 = vector.load %arg3[%c0_4, %c0_5] : memref<1x32xf32, #tpu.memory_space<vmem>>, vector<1x32xf32>
    %5 = vector.broadcast %4 : vector<1x32xf32> to vector<256x32xf32>
    %6 = arith.addf %3, %5 : vector<256x32xf32>
    %cst_6 = arith.constant 0.000000e+00 : f32
    %7 = vector.broadcast %cst_6 : f32 to vector<256x32xf32>
    %8 = arith.maximumf %6, %7 : vector<256x32xf32>
    %cst_7 = arith.constant dense<0.000000e+00> : vector<32xf32>
    %9 = vector.multi_reduction <add>, %8, %cst_7 [0] : vector<256x32xf32> to vector<32xf32>
    %10 = vector.shape_cast %9 : vector<32xf32> to vector<1x32xf32>
    %cst_8 = arith.constant 2.560000e+02 : f32
    %11 = vector.broadcast %cst_8 : f32 to vector<1x32xf32>
    %12 = arith.divf %10, %11 : vector<1x32xf32>
    %c0_9 = arith.constant 0 : index
    %c0_10 = arith.constant 0 : index
    %13 = vector.load %arg4[%c0_9, %c0_10] : memref<32x32xf32, #tpu.memory_space<vmem>>, vector<32x32xf32>
    %cst_11 = arith.constant dense<0.000000e+00> : vector<1x32xf32>
    %14 = tpu.matmul %12, %13, %cst_11 {dimension_numbers = #tpu.dot_dimension_numbers<[1], [0], [0], [1], [0, 0, 1, 1], [], []>} : vector<1x32xf32>, vector<32x32xf32>, vector<1x32xf32> -> vector<1x32xf32>
    %c0_12 = arith.constant 0 : index
    %c0_13 = arith.constant 0 : index
    %15 = vector.load %arg5[%c0_12, %c0_13] : memref<1x32xf32, #tpu.memory_space<vmem>>, vector<1x32xf32>
    %16 = arith.addf %14, %15 : vector<1x32xf32>
    %c0_14 = arith.constant 0 : index
    %c0_15 = arith.constant 0 : index
    %c0_16 = arith.constant 0 : index
    %17 = vector.load %arg6[%c0_14, %c0_15, %c0_16] : memref<1x1x32xf32, #tpu.memory_space<vmem>>, vector<1x1x32xf32>
    %18 = vector.shape_cast %17 : vector<1x1x32xf32> to vector<1x32xf32>
    %19 = vector.shape_cast %16 : vector<1x32xf32> to vector<1x1x32xf32>
    tpu.vector_store %arg6[%c0_14, %c0_15, %c0_16], %19 {strides = array<i32>} : memref<1x1x32xf32, #tpu.memory_space<vmem>>, vector<1x1x32xf32>,
    %20 = math.absf %16 : vector<1x32xf32>
    %cst_17 = arith.constant dense<0.000000e+00> : vector<1xf32>
    %21 = vector.multi_reduction <add>, %20, %cst_17 [1] : vector<1x32xf32> to vector<1xf32>
    %22 = vector.shape_cast %21 : vector<1xf32> to vector<1x1xf32>
    %cst_18 = arith.constant 0.000000e+00 : f32
    %23 = vector.broadcast %cst_18 : f32 to vector<1x1xf32>
    %24 = arith.cmpf one, %22, %23 : vector<1x1xf32>
    %25 = arith.extui %24 : vector<1x1xi1> to vector<1x1xi32>
    %26 = arith.sitofp %25 : vector<1x1xi32> to vector<1x1xf32>
    %c0_19 = arith.constant 0 : index
    %c0_20 = arith.constant 0 : index
    %c0_21 = arith.constant 0 : index
    %27 = vector.load %arg7[%c0_19, %c0_20, %c0_21] : memref<1x1x1xf32, #tpu.memory_space<vmem>>, vector<1x1x1xf32>
    %28 = vector.shape_cast %27 : vector<1x1x1xf32> to vector<1x1xf32>
    %29 = vector.shape_cast %26 : vector<1x1xf32> to vector<1x1x1xf32>
    tpu.vector_store %arg7[%c0_19, %c0_20, %c0_21], %29 {strides = array<i32>} : memref<1x1x1xf32, #tpu.memory_space<vmem>>, vector<1x1x1xf32>,
    return
  }
  func.func @transform_0(%arg0: i32) -> (i32, i32, i32) {
    %c0_i32 = arith.constant 0 : i32
    %c0_i32_0 = arith.constant 0 : i32
    %c0_i32_1 = arith.constant 0 : i32
    return %arg0, %c0_i32, %c0_i32_0 : i32, i32, i32
  }
  func.func @transform_1(%arg0: i32) -> (i32, i32) {
    %c0_i32 = arith.constant 0 : i32
    %c0_i32_0 = arith.constant 0 : i32
    %c0_i32_1 = arith.constant 0 : i32
    return %c0_i32, %c0_i32_0 : i32, i32
  }
  func.func @transform_2(%arg0: i32) -> (i32, i32) {
    %c0_i32 = arith.constant 0 : i32
    %c0_i32_0 = arith.constant 0 : i32
    %c0_i32_1 = arith.constant 0 : i32
    return %c0_i32, %c0_i32_0 : i32, i32
  }
  func.func @transform_3(%arg0: i32) -> (i32, i32) {
    %c0_i32 = arith.constant 0 : i32
    %c0_i32_0 = arith.constant 0 : i32
    %c0_i32_1 = arith.constant 0 : i32
    return %c0_i32, %c0_i32_0 : i32, i32
  }
  func.func @transform_4(%arg0: i32) -> (i32, i32) {
    %c0_i32 = arith.constant 0 : i32
    %c0_i32_0 = arith.constant 0 : i32
    %c0_i32_1 = arith.constant 0 : i32
    return %c0_i32, %c0_i32_0 : i32, i32
  }
  func.func @transform_5(%arg0: i32) -> (i32, i32, i32) {
    %c0_i32 = arith.constant 0 : i32
    %c0_i32_0 = arith.constant 0 : i32
    %c0_i32_1 = arith.constant 0 : i32
    return %arg0, %c0_i32, %c0_i32_0 : i32, i32, i32
  }
  func.func @transform_6(%arg0: i32) -> (i32, i32, i32) {
    %c0_i32 = arith.constant 0 : i32
    %c0_i32_0 = arith.constant 0 : i32
    %c0_i32_1 = arith.constant 0 : i32
    return %arg0, %c0_i32, %c0_i32_0 : i32, i32, i32
  }
}

module attributes {stable_mosaic.version = 11 : i64} {
  func.func @decoder_kernel(%arg0: i32, %arg1: memref<1x8x32xf32, #tpu.memory_space<vmem>>, %arg2: memref<1x8x8xf32, #tpu.memory_space<vmem>>, %arg3: memref<1x4x32xf32, #tpu.memory_space<vmem>>, %arg4: memref<1x8x4xf32, #tpu.memory_space<vmem>>, %arg5: memref<8x32xf32, #tpu.memory_space<vmem>>, %arg6: memref<32x96xf32, #tpu.memory_space<vmem>>, %arg7: memref<1x96xf32, #tpu.memory_space<vmem>>, %arg8: memref<32x32xf32, #tpu.memory_space<vmem>>, %arg9: memref<1x32xf32, #tpu.memory_space<vmem>>, %arg10: memref<32x32xf32, #tpu.memory_space<vmem>>, %arg11: memref<1x32xf32, #tpu.memory_space<vmem>>, %arg12: memref<32x64xf32, #tpu.memory_space<vmem>>, %arg13: memref<1x64xf32, #tpu.memory_space<vmem>>, %arg14: memref<32x32xf32, #tpu.memory_space<vmem>>, %arg15: memref<1x32xf32, #tpu.memory_space<vmem>>, %arg16: memref<32x64xf32, #tpu.memory_space<vmem>>, %arg17: memref<1x64xf32, #tpu.memory_space<vmem>>, %arg18: memref<64x32xf32, #tpu.memory_space<vmem>>, %arg19: memref<1x32xf32, #tpu.memory_space<vmem>>, %arg20: memref<32x64xf32, #tpu.memory_space<vmem>>, %arg21: memref<1x64xf32, #tpu.memory_space<vmem>>, %arg22: memref<1x8x64xf32, #tpu.memory_space<vmem>>) attributes {dimension_semantics = [#tpu.dimension_semantics<parallel>], iteration_bounds = array<i64: 2>, scalar_prefetch = 0 : i64, scratch_operands = 0 : i64, tpu.core_type = #tpu.core_type<tc>, window_params = [{transform_indices = @transform_0, window_bounds = array<i64: 1, 8, 32>}, {transform_indices = @transform_1, window_bounds = array<i64: 1, 8, 8>}, {transform_indices = @transform_2, window_bounds = array<i64: 1, 4, 32>}, {transform_indices = @transform_3, window_bounds = array<i64: 1, 8, 4>}, {pipeline_mode = #tpu.pipeline_mode<synchronous>, transform_indices = @transform_4, window_bounds = array<i64: 8, 32>}, {pipeline_mode = #tpu.pipeline_mode<synchronous>, transform_indices = @transform_5, window_bounds = array<i64: 32, 96>}, {pipeline_mode = #tpu.pipeline_mode<synchronous>, transform_indices = @transform_6, window_bounds = array<i64: 1, 96>}, {pipeline_mode = #tpu.pipeline_mode<synchronous>, transform_indices = @transform_7, window_bounds = array<i64: 32, 32>}, {pipeline_mode = #tpu.pipeline_mode<synchronous>, transform_indices = @transform_8, window_bounds = array<i64: 1, 32>}, {pipeline_mode = #tpu.pipeline_mode<synchronous>, transform_indices = @transform_9, window_bounds = array<i64: 32, 32>}, {pipeline_mode = #tpu.pipeline_mode<synchronous>, transform_indices = @transform_10, window_bounds = array<i64: 1, 32>}, {pipeline_mode = #tpu.pipeline_mode<synchronous>, transform_indices = @transform_11, window_bounds = array<i64: 32, 64>}, {pipeline_mode = #tpu.pipeline_mode<synchronous>, transform_indices = @transform_12, window_bounds = array<i64: 1, 64>}, {pipeline_mode = #tpu.pipeline_mode<synchronous>, transform_indices = @transform_13, window_bounds = array<i64: 32, 32>}, {pipeline_mode = #tpu.pipeline_mode<synchronous>, transform_indices = @transform_14, window_bounds = array<i64: 1, 32>}, {pipeline_mode = #tpu.pipeline_mode<synchronous>, transform_indices = @transform_15, window_bounds = array<i64: 32, 64>}, {pipeline_mode = #tpu.pipeline_mode<synchronous>, transform_indices = @transform_16, window_bounds = array<i64: 1, 64>}, {pipeline_mode = #tpu.pipeline_mode<synchronous>, transform_indices = @transform_17, window_bounds = array<i64: 64, 32>}, {pipeline_mode = #tpu.pipeline_mode<synchronous>, transform_indices = @transform_18, window_bounds = array<i64: 1, 32>}, {pipeline_mode = #tpu.pipeline_mode<synchronous>, transform_indices = @transform_19, window_bounds = array<i64: 32, 64>}, {pipeline_mode = #tpu.pipeline_mode<synchronous>, transform_indices = @transform_20, window_bounds = array<i64: 1, 64>}, {transform_indices = @transform_21, window_bounds = array<i64: 1, 8, 64>}]} {
    %c0 = arith.constant 0 : index
    %c0_0 = arith.constant 0 : index
    %c0_1 = arith.constant 0 : index
    %0 = vector.load %arg1[%c0, %c0_0, %c0_1] : memref<1x8x32xf32, #tpu.memory_space<vmem>>, vector<1x8x32xf32>
    %1 = vector.shape_cast %0 : vector<1x8x32xf32> to vector<8x32xf32>
    %c0_2 = arith.constant 0 : index
    %c0_3 = arith.constant 0 : index
    %c0_4 = arith.constant 0 : index
    %2 = vector.load %arg2[%c0_2, %c0_3, %c0_4] : memref<1x8x8xf32, #tpu.memory_space<vmem>>, vector<1x8x8xf32>
    %3 = vector.shape_cast %2 : vector<1x8x8xf32> to vector<8x8xf32>
    %c0_5 = arith.constant 0 : index
    %c0_6 = arith.constant 0 : index
    %c0_7 = arith.constant 0 : index
    %4 = vector.load %arg3[%c0_5, %c0_6, %c0_7] : memref<1x4x32xf32, #tpu.memory_space<vmem>>, vector<1x4x32xf32>
    %5 = vector.shape_cast %4 : vector<1x4x32xf32> to vector<4x32xf32>
    %c0_8 = arith.constant 0 : index
    %c0_9 = arith.constant 0 : index
    %c0_10 = arith.constant 0 : index
    %6 = vector.load %arg4[%c0_8, %c0_9, %c0_10] : memref<1x8x4xf32, #tpu.memory_space<vmem>>, vector<1x8x4xf32>
    %7 = vector.shape_cast %6 : vector<1x8x4xf32> to vector<8x4xf32>
    %c0_11 = arith.constant 0 : index
    %c0_12 = arith.constant 0 : index
    %8 = vector.load %arg5[%c0_11, %c0_12] : memref<8x32xf32, #tpu.memory_space<vmem>>, vector<8x32xf32>
    %9 = vector.extract_strided_slice %8 {offsets = [0, 0], sizes = [1, 32], strides = [1, 1]} : vector<8x32xf32> to vector<1x32xf32>
    %10 = vector.extract_strided_slice %8 {offsets = [1, 0], sizes = [1, 32], strides = [1, 1]} : vector<8x32xf32> to vector<1x32xf32>
    %cst = arith.constant dense<0.000000e+00> : vector<8xf32>
    %11 = vector.multi_reduction <add>, %1, %cst [1] : vector<8x32xf32> to vector<8xf32>
    %12 = vector.shape_cast %11 : vector<8xf32> to vector<8x1xf32>
    %cst_13 = arith.constant 3.200000e+01 : f32
    %13 = vector.broadcast %cst_13 : f32 to vector<8x1xf32>
    %14 = arith.divf %12, %13 : vector<8x1xf32>
    %15 = vector.broadcast %14 : vector<8x1xf32> to vector<8x32xf32>
    %16 = arith.subf %1, %15 : vector<8x32xf32>
    %17 = arith.mulf %16, %16 : vector<8x32xf32>
    %cst_14 = arith.constant dense<0.000000e+00> : vector<8xf32>
    %18 = vector.multi_reduction <add>, %17, %cst_14 [1] : vector<8x32xf32> to vector<8xf32>
    %19 = vector.shape_cast %18 : vector<8xf32> to vector<8x1xf32>
    %cst_15 = arith.constant 3.200000e+01 : f32
    %20 = vector.broadcast %cst_15 : f32 to vector<8x1xf32>
    %21 = arith.divf %19, %20 : vector<8x1xf32>
    %22 = vector.broadcast %14 : vector<8x1xf32> to vector<8x32xf32>
    %23 = arith.subf %1, %22 : vector<8x32xf32>
    %cst_16 = arith.constant 9.99999974E-6 : f32
    %24 = vector.broadcast %cst_16 : f32 to vector<8x1xf32>
    %25 = arith.addf %21, %24 : vector<8x1xf32>
    %26 = math.rsqrt %25 : vector<8x1xf32>
    %27 = vector.broadcast %26 : vector<8x1xf32> to vector<8x32xf32>
    %28 = arith.mulf %23, %27 : vector<8x32xf32>
    %29 = vector.broadcast %9 : vector<1x32xf32> to vector<8x32xf32>
    %30 = arith.mulf %28, %29 : vector<8x32xf32>
    %31 = vector.broadcast %10 : vector<1x32xf32> to vector<8x32xf32>
    %32 = arith.addf %30, %31 : vector<8x32xf32>
    %c0_17 = arith.constant 0 : index
    %c0_18 = arith.constant 0 : index
    %33 = vector.load %arg6[%c0_17, %c0_18] : memref<32x96xf32, #tpu.memory_space<vmem>>, vector<32x96xf32>
    %cst_19 = arith.constant dense<0.000000e+00> : vector<8x96xf32>
    %34 = tpu.matmul %32, %33, %cst_19 {dimension_numbers = #tpu.dot_dimension_numbers<[1], [0], [0], [1], [0, 0, 1, 1], [], []>} : vector<8x32xf32>, vector<32x96xf32>, vector<8x96xf32> -> vector<8x96xf32>
    %c0_20 = arith.constant 0 : index
    %c0_21 = arith.constant 0 : index
    %35 = vector.load %arg7[%c0_20, %c0_21] : memref<1x96xf32, #tpu.memory_space<vmem>>, vector<1x96xf32>
    %36 = vector.broadcast %35 : vector<1x96xf32> to vector<8x96xf32>
    %37 = arith.addf %34, %36 : vector<8x96xf32>
    %38 = vector.extract_strided_slice %37 {offsets = [0, 0], sizes = [8, 32], strides = [1, 1]} : vector<8x96xf32> to vector<8x32xf32>
    %39 = vector.extract_strided_slice %37 {offsets = [0, 32], sizes = [8, 32], strides = [1, 1]} : vector<8x96xf32> to vector<8x32xf32>
    %40 = vector.extract_strided_slice %37 {offsets = [0, 64], sizes = [8, 32], strides = [1, 1]} : vector<8x96xf32> to vector<8x32xf32>
    %c0_22 = arith.constant 0 : index
    %c0_23 = arith.constant 0 : index
    %41 = vector.load %arg8[%c0_22, %c0_23] : memref<32x32xf32, #tpu.memory_space<vmem>>, vector<32x32xf32>
    %c0_24 = arith.constant 0 : index
    %c0_25 = arith.constant 0 : index
    %42 = vector.load %arg9[%c0_24, %c0_25] : memref<1x32xf32, #tpu.memory_space<vmem>>, vector<1x32xf32>
    %43 = vector.extract_strided_slice %38 {offsets = [0, 0], sizes = [8, 8], strides = [1, 1]} : vector<8x32xf32> to vector<8x8xf32>
    %44 = vector.extract_strided_slice %39 {offsets = [0, 0], sizes = [8, 8], strides = [1, 1]} : vector<8x32xf32> to vector<8x8xf32>
    %45 = vector.extract_strided_slice %40 {offsets = [0, 0], sizes = [8, 8], strides = [1, 1]} : vector<8x32xf32> to vector<8x8xf32>
    %cst_26 = arith.constant dense<0.000000e+00> : vector<8x8xf32>
    %46 = tpu.matmul %43, %44, %cst_26 {dimension_numbers = #tpu.dot_dimension_numbers<[1], [1], [0], [0], [0, 0, 1, 0], [], []>} : vector<8x8xf32>, vector<8x8xf32>, vector<8x8xf32> -> vector<8x8xf32>
    %cst_27 = arith.constant 0.353553385 : f32
    %47 = vector.broadcast %cst_27 : f32 to vector<8x8xf32>
    %48 = arith.mulf %46, %47 : vector<8x8xf32>
    %49 = arith.addf %48, %3 : vector<8x8xf32>
    %cst_28 = arith.constant dense<0xFF800000> : vector<8xf32>
    %50 = vector.multi_reduction <maximumf>, %49, %cst_28 [1] : vector<8x8xf32> to vector<8xf32>
    %51 = vector.shape_cast %50 : vector<8xf32> to vector<8x1xf32>
    %52 = vector.broadcast %51 : vector<8x1xf32> to vector<8x8xf32>
    %53 = arith.subf %49, %52 : vector<8x8xf32>
    %54 = math.exp %53 : vector<8x8xf32>
    %cst_29 = arith.constant dense<0.000000e+00> : vector<8xf32>
    %55 = vector.multi_reduction <add>, %54, %cst_29 [1] : vector<8x8xf32> to vector<8xf32>
    %56 = vector.shape_cast %55 : vector<8xf32> to vector<8x1xf32>
    %57 = tpu.reciprocal %56 {approx = true} : vector<8x1xf32> -> vector<8x1xf32>
    %58 = vector.broadcast %57 : vector<8x1xf32> to vector<8x8xf32>
    %59 = arith.mulf %54, %58 : vector<8x8xf32>
    %cst_30 = arith.constant dense<0.000000e+00> : vector<8x8xf32>
    %60 = tpu.matmul %59, %45, %cst_30 {dimension_numbers = #tpu.dot_dimension_numbers<[1], [0], [0], [1], [0, 0, 1, 1], [], []>} : vector<8x8xf32>, vector<8x8xf32>, vector<8x8xf32> -> vector<8x8xf32>
    %61 = vector.extract_strided_slice %41 {offsets = [0, 0], sizes = [8, 32], strides = [1, 1]} : vector<32x32xf32> to vector<8x32xf32>
    %cst_31 = arith.constant dense<0.000000e+00> : vector<8x32xf32>
    %62 = tpu.matmul %60, %61, %cst_31 {dimension_numbers = #tpu.dot_dimension_numbers<[1], [0], [0], [1], [0, 0, 1, 1], [], []>} : vector<8x8xf32>, vector<8x32xf32>, vector<8x32xf32> -> vector<8x32xf32>
    %63 = vector.extract_strided_slice %38 {offsets = [0, 8], sizes = [8, 8], strides = [1, 1]} : vector<8x32xf32> to vector<8x8xf32>
    %64 = vector.extract_strided_slice %39 {offsets = [0, 8], sizes = [8, 8], strides = [1, 1]} : vector<8x32xf32> to vector<8x8xf32>
    %65 = vector.extract_strided_slice %40 {offsets = [0, 8], sizes = [8, 8], strides = [1, 1]} : vector<8x32xf32> to vector<8x8xf32>
    %cst_32 = arith.constant dense<0.000000e+00> : vector<8x8xf32>
    %66 = tpu.matmul %63, %64, %cst_32 {dimension_numbers = #tpu.dot_dimension_numbers<[1], [1], [0], [0], [0, 0, 1, 0], [], []>} : vector<8x8xf32>, vector<8x8xf32>, vector<8x8xf32> -> vector<8x8xf32>
    %cst_33 = arith.constant 0.353553385 : f32
    %67 = vector.broadcast %cst_33 : f32 to vector<8x8xf32>
    %68 = arith.mulf %66, %67 : vector<8x8xf32>
    %69 = arith.addf %68, %3 : vector<8x8xf32>
    %cst_34 = arith.constant dense<0xFF800000> : vector<8xf32>
    %70 = vector.multi_reduction <maximumf>, %69, %cst_34 [1] : vector<8x8xf32> to vector<8xf32>
    %71 = vector.shape_cast %70 : vector<8xf32> to vector<8x1xf32>
    %72 = vector.broadcast %71 : vector<8x1xf32> to vector<8x8xf32>
    %73 = arith.subf %69, %72 : vector<8x8xf32>
    %74 = math.exp %73 : vector<8x8xf32>
    %cst_35 = arith.constant dense<0.000000e+00> : vector<8xf32>
    %75 = vector.multi_reduction <add>, %74, %cst_35 [1] : vector<8x8xf32> to vector<8xf32>
    %76 = vector.shape_cast %75 : vector<8xf32> to vector<8x1xf32>
    %77 = tpu.reciprocal %76 {approx = true} : vector<8x1xf32> -> vector<8x1xf32>
    %78 = vector.broadcast %77 : vector<8x1xf32> to vector<8x8xf32>
    %79 = arith.mulf %74, %78 : vector<8x8xf32>
    %cst_36 = arith.constant dense<0.000000e+00> : vector<8x8xf32>
    %80 = tpu.matmul %79, %65, %cst_36 {dimension_numbers = #tpu.dot_dimension_numbers<[1], [0], [0], [1], [0, 0, 1, 1], [], []>} : vector<8x8xf32>, vector<8x8xf32>, vector<8x8xf32> -> vector<8x8xf32>
    %81 = vector.extract_strided_slice %41 {offsets = [8, 0], sizes = [8, 32], strides = [1, 1]} : vector<32x32xf32> to vector<8x32xf32>
    %cst_37 = arith.constant dense<0.000000e+00> : vector<8x32xf32>
    %82 = tpu.matmul %80, %81, %cst_37 {dimension_numbers = #tpu.dot_dimension_numbers<[1], [0], [0], [1], [0, 0, 1, 1], [], []>} : vector<8x8xf32>, vector<8x32xf32>, vector<8x32xf32> -> vector<8x32xf32>
    %83 = arith.addf %62, %82 : vector<8x32xf32>
    %84 = vector.extract_strided_slice %38 {offsets = [0, 16], sizes = [8, 8], strides = [1, 1]} : vector<8x32xf32> to vector<8x8xf32>
    %85 = vector.extract_strided_slice %39 {offsets = [0, 16], sizes = [8, 8], strides = [1, 1]} : vector<8x32xf32> to vector<8x8xf32>
    %86 = vector.extract_strided_slice %40 {offsets = [0, 16], sizes = [8, 8], strides = [1, 1]} : vector<8x32xf32> to vector<8x8xf32>
    %cst_38 = arith.constant dense<0.000000e+00> : vector<8x8xf32>
    %87 = tpu.matmul %84, %85, %cst_38 {dimension_numbers = #tpu.dot_dimension_numbers<[1], [1], [0], [0], [0, 0, 1, 0], [], []>} : vector<8x8xf32>, vector<8x8xf32>, vector<8x8xf32> -> vector<8x8xf32>
    %cst_39 = arith.constant 0.353553385 : f32
    %88 = vector.broadcast %cst_39 : f32 to vector<8x8xf32>
    %89 = arith.mulf %87, %88 : vector<8x8xf32>
    %90 = arith.addf %89, %3 : vector<8x8xf32>
    %cst_40 = arith.constant dense<0xFF800000> : vector<8xf32>
    %91 = vector.multi_reduction <maximumf>, %90, %cst_40 [1] : vector<8x8xf32> to vector<8xf32>
    %92 = vector.shape_cast %91 : vector<8xf32> to vector<8x1xf32>
    %93 = vector.broadcast %92 : vector<8x1xf32> to vector<8x8xf32>
    %94 = arith.subf %90, %93 : vector<8x8xf32>
    %95 = math.exp %94 : vector<8x8xf32>
    %cst_41 = arith.constant dense<0.000000e+00> : vector<8xf32>
    %96 = vector.multi_reduction <add>, %95, %cst_41 [1] : vector<8x8xf32> to vector<8xf32>
    %97 = vector.shape_cast %96 : vector<8xf32> to vector<8x1xf32>
    %98 = tpu.reciprocal %97 {approx = true} : vector<8x1xf32> -> vector<8x1xf32>
    %99 = vector.broadcast %98 : vector<8x1xf32> to vector<8x8xf32>
    %100 = arith.mulf %95, %99 : vector<8x8xf32>
    %cst_42 = arith.constant dense<0.000000e+00> : vector<8x8xf32>
    %101 = tpu.matmul %100, %86, %cst_42 {dimension_numbers = #tpu.dot_dimension_numbers<[1], [0], [0], [1], [0, 0, 1, 1], [], []>} : vector<8x8xf32>, vector<8x8xf32>, vector<8x8xf32> -> vector<8x8xf32>
    %102 = vector.extract_strided_slice %41 {offsets = [16, 0], sizes = [8, 32], strides = [1, 1]} : vector<32x32xf32> to vector<8x32xf32>
    %cst_43 = arith.constant dense<0.000000e+00> : vector<8x32xf32>
    %103 = tpu.matmul %101, %102, %cst_43 {dimension_numbers = #tpu.dot_dimension_numbers<[1], [0], [0], [1], [0, 0, 1, 1], [], []>} : vector<8x8xf32>, vector<8x32xf32>, vector<8x32xf32> -> vector<8x32xf32>
    %104 = arith.addf %83, %103 : vector<8x32xf32>
    %105 = vector.extract_strided_slice %38 {offsets = [0, 24], sizes = [8, 8], strides = [1, 1]} : vector<8x32xf32> to vector<8x8xf32>
    %106 = vector.extract_strided_slice %39 {offsets = [0, 24], sizes = [8, 8], strides = [1, 1]} : vector<8x32xf32> to vector<8x8xf32>
    %107 = vector.extract_strided_slice %40 {offsets = [0, 24], sizes = [8, 8], strides = [1, 1]} : vector<8x32xf32> to vector<8x8xf32>
    %cst_44 = arith.constant dense<0.000000e+00> : vector<8x8xf32>
    %108 = tpu.matmul %105, %106, %cst_44 {dimension_numbers = #tpu.dot_dimension_numbers<[1], [1], [0], [0], [0, 0, 1, 0], [], []>} : vector<8x8xf32>, vector<8x8xf32>, vector<8x8xf32> -> vector<8x8xf32>
    %cst_45 = arith.constant 0.353553385 : f32
    %109 = vector.broadcast %cst_45 : f32 to vector<8x8xf32>
    %110 = arith.mulf %108, %109 : vector<8x8xf32>
    %111 = arith.addf %110, %3 : vector<8x8xf32>
    %cst_46 = arith.constant dense<0xFF800000> : vector<8xf32>
    %112 = vector.multi_reduction <maximumf>, %111, %cst_46 [1] : vector<8x8xf32> to vector<8xf32>
    %113 = vector.shape_cast %112 : vector<8xf32> to vector<8x1xf32>
    %114 = vector.broadcast %113 : vector<8x1xf32> to vector<8x8xf32>
    %115 = arith.subf %111, %114 : vector<8x8xf32>
    %116 = math.exp %115 : vector<8x8xf32>
    %cst_47 = arith.constant dense<0.000000e+00> : vector<8xf32>
    %117 = vector.multi_reduction <add>, %116, %cst_47 [1] : vector<8x8xf32> to vector<8xf32>
    %118 = vector.shape_cast %117 : vector<8xf32> to vector<8x1xf32>
    %119 = tpu.reciprocal %118 {approx = true} : vector<8x1xf32> -> vector<8x1xf32>
    %120 = vector.broadcast %119 : vector<8x1xf32> to vector<8x8xf32>
    %121 = arith.mulf %116, %120 : vector<8x8xf32>
    %cst_48 = arith.constant dense<0.000000e+00> : vector<8x8xf32>
    %122 = tpu.matmul %121, %107, %cst_48 {dimension_numbers = #tpu.dot_dimension_numbers<[1], [0], [0], [1], [0, 0, 1, 1], [], []>} : vector<8x8xf32>, vector<8x8xf32>, vector<8x8xf32> -> vector<8x8xf32>
    %123 = vector.extract_strided_slice %41 {offsets = [24, 0], sizes = [8, 32], strides = [1, 1]} : vector<32x32xf32> to vector<8x32xf32>
    %cst_49 = arith.constant dense<0.000000e+00> : vector<8x32xf32>
    %124 = tpu.matmul %122, %123, %cst_49 {dimension_numbers = #tpu.dot_dimension_numbers<[1], [0], [0], [1], [0, 0, 1, 1], [], []>} : vector<8x8xf32>, vector<8x32xf32>, vector<8x32xf32> -> vector<8x32xf32>
    %125 = arith.addf %104, %124 : vector<8x32xf32>
    %126 = vector.broadcast %42 : vector<1x32xf32> to vector<8x32xf32>
    %127 = arith.addf %125, %126 : vector<8x32xf32>
    %128 = arith.addf %32, %127 : vector<8x32xf32>
    %129 = vector.extract_strided_slice %8 {offsets = [2, 0], sizes = [1, 32], strides = [1, 1]} : vector<8x32xf32> to vector<1x32xf32>
    %130 = vector.extract_strided_slice %8 {offsets = [3, 0], sizes = [1, 32], strides = [1, 1]} : vector<8x32xf32> to vector<1x32xf32>
    %cst_50 = arith.constant dense<0.000000e+00> : vector<8xf32>
    %131 = vector.multi_reduction <add>, %128, %cst_50 [1] : vector<8x32xf32> to vector<8xf32>
    %132 = vector.shape_cast %131 : vector<8xf32> to vector<8x1xf32>
    %cst_51 = arith.constant 3.200000e+01 : f32
    %133 = vector.broadcast %cst_51 : f32 to vector<8x1xf32>
    %134 = arith.divf %132, %133 : vector<8x1xf32>
    %135 = vector.broadcast %134 : vector<8x1xf32> to vector<8x32xf32>
    %136 = arith.subf %128, %135 : vector<8x32xf32>
    %137 = arith.mulf %136, %136 : vector<8x32xf32>
    %cst_52 = arith.constant dense<0.000000e+00> : vector<8xf32>
    %138 = vector.multi_reduction <add>, %137, %cst_52 [1] : vector<8x32xf32> to vector<8xf32>
    %139 = vector.shape_cast %138 : vector<8xf32> to vector<8x1xf32>
    %cst_53 = arith.constant 3.200000e+01 : f32
    %140 = vector.broadcast %cst_53 : f32 to vector<8x1xf32>
    %141 = arith.divf %139, %140 : vector<8x1xf32>
    %142 = vector.broadcast %134 : vector<8x1xf32> to vector<8x32xf32>
    %143 = arith.subf %128, %142 : vector<8x32xf32>
    %cst_54 = arith.constant 9.99999974E-6 : f32
    %144 = vector.broadcast %cst_54 : f32 to vector<8x1xf32>
    %145 = arith.addf %141, %144 : vector<8x1xf32>
    %146 = math.rsqrt %145 : vector<8x1xf32>
    %147 = vector.broadcast %146 : vector<8x1xf32> to vector<8x32xf32>
    %148 = arith.mulf %143, %147 : vector<8x32xf32>
    %149 = vector.broadcast %129 : vector<1x32xf32> to vector<8x32xf32>
    %150 = arith.mulf %148, %149 : vector<8x32xf32>
    %151 = vector.broadcast %130 : vector<1x32xf32> to vector<8x32xf32>
    %152 = arith.addf %150, %151 : vector<8x32xf32>
    %c0_55 = arith.constant 0 : index
    %c0_56 = arith.constant 0 : index
    %153 = vector.load %arg10[%c0_55, %c0_56] : memref<32x32xf32, #tpu.memory_space<vmem>>, vector<32x32xf32>
    %cst_57 = arith.constant dense<0.000000e+00> : vector<8x32xf32>
    %154 = tpu.matmul %152, %153, %cst_57 {dimension_numbers = #tpu.dot_dimension_numbers<[1], [0], [0], [1], [0, 0, 1, 1], [], []>} : vector<8x32xf32>, vector<32x32xf32>, vector<8x32xf32> -> vector<8x32xf32>
    %c0_58 = arith.constant 0 : index
    %c0_59 = arith.constant 0 : index
    %155 = vector.load %arg11[%c0_58, %c0_59] : memref<1x32xf32, #tpu.memory_space<vmem>>, vector<1x32xf32>
    %156 = vector.broadcast %155 : vector<1x32xf32> to vector<8x32xf32>
    %157 = arith.addf %154, %156 : vector<8x32xf32>
    %c0_60 = arith.constant 0 : index
    %c0_61 = arith.constant 0 : index
    %158 = vector.load %arg12[%c0_60, %c0_61] : memref<32x64xf32, #tpu.memory_space<vmem>>, vector<32x64xf32>
    %cst_62 = arith.constant dense<0.000000e+00> : vector<4x64xf32>
    %159 = tpu.matmul %5, %158, %cst_62 {dimension_numbers = #tpu.dot_dimension_numbers<[1], [0], [0], [1], [0, 0, 1, 1], [], []>} : vector<4x32xf32>, vector<32x64xf32>, vector<4x64xf32> -> vector<4x64xf32>
    %c0_63 = arith.constant 0 : index
    %c0_64 = arith.constant 0 : index
    %160 = vector.load %arg13[%c0_63, %c0_64] : memref<1x64xf32, #tpu.memory_space<vmem>>, vector<1x64xf32>
    %161 = vector.broadcast %160 : vector<1x64xf32> to vector<4x64xf32>
    %162 = arith.addf %159, %161 : vector<4x64xf32>
    %163 = vector.extract_strided_slice %162 {offsets = [0, 0], sizes = [4, 32], strides = [1, 1]} : vector<4x64xf32> to vector<4x32xf32>
    %164 = vector.extract_strided_slice %162 {offsets = [0, 32], sizes = [4, 32], strides = [1, 1]} : vector<4x64xf32> to vector<4x32xf32>
    %c0_65 = arith.constant 0 : index
    %c0_66 = arith.constant 0 : index
    %165 = vector.load %arg14[%c0_65, %c0_66] : memref<32x32xf32, #tpu.memory_space<vmem>>, vector<32x32xf32>
    %c0_67 = arith.constant 0 : index
    %c0_68 = arith.constant 0 : index
    %166 = vector.load %arg15[%c0_67, %c0_68] : memref<1x32xf32, #tpu.memory_space<vmem>>, vector<1x32xf32>
    %167 = vector.extract_strided_slice %157 {offsets = [0, 0], sizes = [8, 8], strides = [1, 1]} : vector<8x32xf32> to vector<8x8xf32>
    %168 = vector.extract_strided_slice %163 {offsets = [0, 0], sizes = [4, 8], strides = [1, 1]} : vector<4x32xf32> to vector<4x8xf32>
    %169 = vector.extract_strided_slice %164 {offsets = [0, 0], sizes = [4, 8], strides = [1, 1]} : vector<4x32xf32> to vector<4x8xf32>
    %cst_69 = arith.constant dense<0.000000e+00> : vector<8x4xf32>
    %170 = tpu.matmul %167, %168, %cst_69 {dimension_numbers = #tpu.dot_dimension_numbers<[1], [1], [0], [0], [0, 0, 1, 0], [], []>} : vector<8x8xf32>, vector<4x8xf32>, vector<8x4xf32> -> vector<8x4xf32>
    %cst_70 = arith.constant 0.353553385 : f32
    %171 = vector.broadcast %cst_70 : f32 to vector<8x4xf32>
    %172 = arith.mulf %170, %171 : vector<8x4xf32>
    %173 = arith.addf %172, %7 : vector<8x4xf32>
    %cst_71 = arith.constant dense<0xFF800000> : vector<8xf32>
    %174 = vector.multi_reduction <maximumf>, %173, %cst_71 [1] : vector<8x4xf32> to vector<8xf32>
    %175 = vector.shape_cast %174 : vector<8xf32> to vector<8x1xf32>
    %176 = vector.broadcast %175 : vector<8x1xf32> to vector<8x4xf32>
    %177 = arith.subf %173, %176 : vector<8x4xf32>
    %178 = math.exp %177 : vector<8x4xf32>
    %cst_72 = arith.constant dense<0.000000e+00> : vector<8xf32>
    %179 = vector.multi_reduction <add>, %178, %cst_72 [1] : vector<8x4xf32> to vector<8xf32>
    %180 = vector.shape_cast %179 : vector<8xf32> to vector<8x1xf32>
    %181 = tpu.reciprocal %180 {approx = true} : vector<8x1xf32> -> vector<8x1xf32>
    %182 = vector.broadcast %181 : vector<8x1xf32> to vector<8x4xf32>
    %183 = arith.mulf %178, %182 : vector<8x4xf32>
    %cst_73 = arith.constant dense<0.000000e+00> : vector<8x8xf32>
    %184 = tpu.matmul %183, %169, %cst_73 {dimension_numbers = #tpu.dot_dimension_numbers<[1], [0], [0], [1], [0, 0, 1, 1], [], []>} : vector<8x4xf32>, vector<4x8xf32>, vector<8x8xf32> -> vector<8x8xf32>
    %185 = vector.extract_strided_slice %165 {offsets = [0, 0], sizes = [8, 32], strides = [1, 1]} : vector<32x32xf32> to vector<8x32xf32>
    %cst_74 = arith.constant dense<0.000000e+00> : vector<8x32xf32>
    %186 = tpu.matmul %184, %185, %cst_74 {dimension_numbers = #tpu.dot_dimension_numbers<[1], [0], [0], [1], [0, 0, 1, 1], [], []>} : vector<8x8xf32>, vector<8x32xf32>, vector<8x32xf32> -> vector<8x32xf32>
    %187 = vector.extract_strided_slice %157 {offsets = [0, 8], sizes = [8, 8], strides = [1, 1]} : vector<8x32xf32> to vector<8x8xf32>
    %188 = vector.extract_strided_slice %163 {offsets = [0, 8], sizes = [4, 8], strides = [1, 1]} : vector<4x32xf32> to vector<4x8xf32>
    %189 = vector.extract_strided_slice %164 {offsets = [0, 8], sizes = [4, 8], strides = [1, 1]} : vector<4x32xf32> to vector<4x8xf32>
    %cst_75 = arith.constant dense<0.000000e+00> : vector<8x4xf32>
    %190 = tpu.matmul %187, %188, %cst_75 {dimension_numbers = #tpu.dot_dimension_numbers<[1], [1], [0], [0], [0, 0, 1, 0], [], []>} : vector<8x8xf32>, vector<4x8xf32>, vector<8x4xf32> -> vector<8x4xf32>
    %cst_76 = arith.constant 0.353553385 : f32
    %191 = vector.broadcast %cst_76 : f32 to vector<8x4xf32>
    %192 = arith.mulf %190, %191 : vector<8x4xf32>
    %193 = arith.addf %192, %7 : vector<8x4xf32>
    %cst_77 = arith.constant dense<0xFF800000> : vector<8xf32>
    %194 = vector.multi_reduction <maximumf>, %193, %cst_77 [1] : vector<8x4xf32> to vector<8xf32>
    %195 = vector.shape_cast %194 : vector<8xf32> to vector<8x1xf32>
    %196 = vector.broadcast %195 : vector<8x1xf32> to vector<8x4xf32>
    %197 = arith.subf %193, %196 : vector<8x4xf32>
    %198 = math.exp %197 : vector<8x4xf32>
    %cst_78 = arith.constant dense<0.000000e+00> : vector<8xf32>
    %199 = vector.multi_reduction <add>, %198, %cst_78 [1] : vector<8x4xf32> to vector<8xf32>
    %200 = vector.shape_cast %199 : vector<8xf32> to vector<8x1xf32>
    %201 = tpu.reciprocal %200 {approx = true} : vector<8x1xf32> -> vector<8x1xf32>
    %202 = vector.broadcast %201 : vector<8x1xf32> to vector<8x4xf32>
    %203 = arith.mulf %198, %202 : vector<8x4xf32>
    %cst_79 = arith.constant dense<0.000000e+00> : vector<8x8xf32>
    %204 = tpu.matmul %203, %189, %cst_79 {dimension_numbers = #tpu.dot_dimension_numbers<[1], [0], [0], [1], [0, 0, 1, 1], [], []>} : vector<8x4xf32>, vector<4x8xf32>, vector<8x8xf32> -> vector<8x8xf32>
    %205 = vector.extract_strided_slice %165 {offsets = [8, 0], sizes = [8, 32], strides = [1, 1]} : vector<32x32xf32> to vector<8x32xf32>
    %cst_80 = arith.constant dense<0.000000e+00> : vector<8x32xf32>
    %206 = tpu.matmul %204, %205, %cst_80 {dimension_numbers = #tpu.dot_dimension_numbers<[1], [0], [0], [1], [0, 0, 1, 1], [], []>} : vector<8x8xf32>, vector<8x32xf32>, vector<8x32xf32> -> vector<8x32xf32>
    %207 = arith.addf %186, %206 : vector<8x32xf32>
    %208 = vector.extract_strided_slice %157 {offsets = [0, 16], sizes = [8, 8], strides = [1, 1]} : vector<8x32xf32> to vector<8x8xf32>
    %209 = vector.extract_strided_slice %163 {offsets = [0, 16], sizes = [4, 8], strides = [1, 1]} : vector<4x32xf32> to vector<4x8xf32>
    %210 = vector.extract_strided_slice %164 {offsets = [0, 16], sizes = [4, 8], strides = [1, 1]} : vector<4x32xf32> to vector<4x8xf32>
    %cst_81 = arith.constant dense<0.000000e+00> : vector<8x4xf32>
    %211 = tpu.matmul %208, %209, %cst_81 {dimension_numbers = #tpu.dot_dimension_numbers<[1], [1], [0], [0], [0, 0, 1, 0], [], []>} : vector<8x8xf32>, vector<4x8xf32>, vector<8x4xf32> -> vector<8x4xf32>
    %cst_82 = arith.constant 0.353553385 : f32
    %212 = vector.broadcast %cst_82 : f32 to vector<8x4xf32>
    %213 = arith.mulf %211, %212 : vector<8x4xf32>
    %214 = arith.addf %213, %7 : vector<8x4xf32>
    %cst_83 = arith.constant dense<0xFF800000> : vector<8xf32>
    %215 = vector.multi_reduction <maximumf>, %214, %cst_83 [1] : vector<8x4xf32> to vector<8xf32>
    %216 = vector.shape_cast %215 : vector<8xf32> to vector<8x1xf32>
    %217 = vector.broadcast %216 : vector<8x1xf32> to vector<8x4xf32>
    %218 = arith.subf %214, %217 : vector<8x4xf32>
    %219 = math.exp %218 : vector<8x4xf32>
    %cst_84 = arith.constant dense<0.000000e+00> : vector<8xf32>
    %220 = vector.multi_reduction <add>, %219, %cst_84 [1] : vector<8x4xf32> to vector<8xf32>
    %221 = vector.shape_cast %220 : vector<8xf32> to vector<8x1xf32>
    %222 = tpu.reciprocal %221 {approx = true} : vector<8x1xf32> -> vector<8x1xf32>
    %223 = vector.broadcast %222 : vector<8x1xf32> to vector<8x4xf32>
    %224 = arith.mulf %219, %223 : vector<8x4xf32>
    %cst_85 = arith.constant dense<0.000000e+00> : vector<8x8xf32>
    %225 = tpu.matmul %224, %210, %cst_85 {dimension_numbers = #tpu.dot_dimension_numbers<[1], [0], [0], [1], [0, 0, 1, 1], [], []>} : vector<8x4xf32>, vector<4x8xf32>, vector<8x8xf32> -> vector<8x8xf32>
    %226 = vector.extract_strided_slice %165 {offsets = [16, 0], sizes = [8, 32], strides = [1, 1]} : vector<32x32xf32> to vector<8x32xf32>
    %cst_86 = arith.constant dense<0.000000e+00> : vector<8x32xf32>
    %227 = tpu.matmul %225, %226, %cst_86 {dimension_numbers = #tpu.dot_dimension_numbers<[1], [0], [0], [1], [0, 0, 1, 1], [], []>} : vector<8x8xf32>, vector<8x32xf32>, vector<8x32xf32> -> vector<8x32xf32>
    %228 = arith.addf %207, %227 : vector<8x32xf32>
    %229 = vector.extract_strided_slice %157 {offsets = [0, 24], sizes = [8, 8], strides = [1, 1]} : vector<8x32xf32> to vector<8x8xf32>
    %230 = vector.extract_strided_slice %163 {offsets = [0, 24], sizes = [4, 8], strides = [1, 1]} : vector<4x32xf32> to vector<4x8xf32>
    %231 = vector.extract_strided_slice %164 {offsets = [0, 24], sizes = [4, 8], strides = [1, 1]} : vector<4x32xf32> to vector<4x8xf32>
    %cst_87 = arith.constant dense<0.000000e+00> : vector<8x4xf32>
    %232 = tpu.matmul %229, %230, %cst_87 {dimension_numbers = #tpu.dot_dimension_numbers<[1], [1], [0], [0], [0, 0, 1, 0], [], []>} : vector<8x8xf32>, vector<4x8xf32>, vector<8x4xf32> -> vector<8x4xf32>
    %cst_88 = arith.constant 0.353553385 : f32
    %233 = vector.broadcast %cst_88 : f32 to vector<8x4xf32>
    %234 = arith.mulf %232, %233 : vector<8x4xf32>
    %235 = arith.addf %234, %7 : vector<8x4xf32>
    %cst_89 = arith.constant dense<0xFF800000> : vector<8xf32>
    %236 = vector.multi_reduction <maximumf>, %235, %cst_89 [1] : vector<8x4xf32> to vector<8xf32>
    %237 = vector.shape_cast %236 : vector<8xf32> to vector<8x1xf32>
    %238 = vector.broadcast %237 : vector<8x1xf32> to vector<8x4xf32>
    %239 = arith.subf %235, %238 : vector<8x4xf32>
    %240 = math.exp %239 : vector<8x4xf32>
    %cst_90 = arith.constant dense<0.000000e+00> : vector<8xf32>
    %241 = vector.multi_reduction <add>, %240, %cst_90 [1] : vector<8x4xf32> to vector<8xf32>
    %242 = vector.shape_cast %241 : vector<8xf32> to vector<8x1xf32>
    %243 = tpu.reciprocal %242 {approx = true} : vector<8x1xf32> -> vector<8x1xf32>
    %244 = vector.broadcast %243 : vector<8x1xf32> to vector<8x4xf32>
    %245 = arith.mulf %240, %244 : vector<8x4xf32>
    %cst_91 = arith.constant dense<0.000000e+00> : vector<8x8xf32>
    %246 = tpu.matmul %245, %231, %cst_91 {dimension_numbers = #tpu.dot_dimension_numbers<[1], [0], [0], [1], [0, 0, 1, 1], [], []>} : vector<8x4xf32>, vector<4x8xf32>, vector<8x8xf32> -> vector<8x8xf32>
    %247 = vector.extract_strided_slice %165 {offsets = [24, 0], sizes = [8, 32], strides = [1, 1]} : vector<32x32xf32> to vector<8x32xf32>
    %cst_92 = arith.constant dense<0.000000e+00> : vector<8x32xf32>
    %248 = tpu.matmul %246, %247, %cst_92 {dimension_numbers = #tpu.dot_dimension_numbers<[1], [0], [0], [1], [0, 0, 1, 1], [], []>} : vector<8x8xf32>, vector<8x32xf32>, vector<8x32xf32> -> vector<8x32xf32>
    %249 = arith.addf %228, %248 : vector<8x32xf32>
    %250 = vector.broadcast %166 : vector<1x32xf32> to vector<8x32xf32>
    %251 = arith.addf %249, %250 : vector<8x32xf32>
    %252 = arith.addf %152, %251 : vector<8x32xf32>
    %253 = vector.extract_strided_slice %8 {offsets = [4, 0], sizes = [1, 32], strides = [1, 1]} : vector<8x32xf32> to vector<1x32xf32>
    %254 = vector.extract_strided_slice %8 {offsets = [5, 0], sizes = [1, 32], strides = [1, 1]} : vector<8x32xf32> to vector<1x32xf32>
    %cst_93 = arith.constant dense<0.000000e+00> : vector<8xf32>
    %255 = vector.multi_reduction <add>, %252, %cst_93 [1] : vector<8x32xf32> to vector<8xf32>
    %256 = vector.shape_cast %255 : vector<8xf32> to vector<8x1xf32>
    %cst_94 = arith.constant 3.200000e+01 : f32
    %257 = vector.broadcast %cst_94 : f32 to vector<8x1xf32>
    %258 = arith.divf %256, %257 : vector<8x1xf32>
    %259 = vector.broadcast %258 : vector<8x1xf32> to vector<8x32xf32>
    %260 = arith.subf %252, %259 : vector<8x32xf32>
    %261 = arith.mulf %260, %260 : vector<8x32xf32>
    %cst_95 = arith.constant dense<0.000000e+00> : vector<8xf32>
    %262 = vector.multi_reduction <add>, %261, %cst_95 [1] : vector<8x32xf32> to vector<8xf32>
    %263 = vector.shape_cast %262 : vector<8xf32> to vector<8x1xf32>
    %cst_96 = arith.constant 3.200000e+01 : f32
    %264 = vector.broadcast %cst_96 : f32 to vector<8x1xf32>
    %265 = arith.divf %263, %264 : vector<8x1xf32>
    %266 = vector.broadcast %258 : vector<8x1xf32> to vector<8x32xf32>
    %267 = arith.subf %252, %266 : vector<8x32xf32>
    %cst_97 = arith.constant 9.99999974E-6 : f32
    %268 = vector.broadcast %cst_97 : f32 to vector<8x1xf32>
    %269 = arith.addf %265, %268 : vector<8x1xf32>
    %270 = math.rsqrt %269 : vector<8x1xf32>
    %271 = vector.broadcast %270 : vector<8x1xf32> to vector<8x32xf32>
    %272 = arith.mulf %267, %271 : vector<8x32xf32>
    %273 = vector.broadcast %253 : vector<1x32xf32> to vector<8x32xf32>
    %274 = arith.mulf %272, %273 : vector<8x32xf32>
    %275 = vector.broadcast %254 : vector<1x32xf32> to vector<8x32xf32>
    %276 = arith.addf %274, %275 : vector<8x32xf32>
    %c0_98 = arith.constant 0 : index
    %c0_99 = arith.constant 0 : index
    %277 = vector.load %arg16[%c0_98, %c0_99] : memref<32x64xf32, #tpu.memory_space<vmem>>, vector<32x64xf32>
    %cst_100 = arith.constant dense<0.000000e+00> : vector<8x64xf32>
    %278 = tpu.matmul %276, %277, %cst_100 {dimension_numbers = #tpu.dot_dimension_numbers<[1], [0], [0], [1], [0, 0, 1, 1], [], []>} : vector<8x32xf32>, vector<32x64xf32>, vector<8x64xf32> -> vector<8x64xf32>
    %c0_101 = arith.constant 0 : index
    %c0_102 = arith.constant 0 : index
    %279 = vector.load %arg17[%c0_101, %c0_102] : memref<1x64xf32, #tpu.memory_space<vmem>>, vector<1x64xf32>
    %280 = vector.broadcast %279 : vector<1x64xf32> to vector<8x64xf32>
    %281 = arith.addf %278, %280 : vector<8x64xf32>
    %cst_103 = arith.constant 0.000000e+00 : f32
    %282 = vector.broadcast %cst_103 : f32 to vector<8x64xf32>
    %283 = arith.maximumf %281, %282 : vector<8x64xf32>
    %c0_104 = arith.constant 0 : index
    %c0_105 = arith.constant 0 : index
    %284 = vector.load %arg18[%c0_104, %c0_105] : memref<64x32xf32, #tpu.memory_space<vmem>>, vector<64x32xf32>
    %cst_106 = arith.constant dense<0.000000e+00> : vector<8x32xf32>
    %285 = tpu.matmul %283, %284, %cst_106 {dimension_numbers = #tpu.dot_dimension_numbers<[1], [0], [0], [1], [0, 0, 1, 1], [], []>} : vector<8x64xf32>, vector<64x32xf32>, vector<8x32xf32> -> vector<8x32xf32>
    %c0_107 = arith.constant 0 : index
    %c0_108 = arith.constant 0 : index
    %286 = vector.load %arg19[%c0_107, %c0_108] : memref<1x32xf32, #tpu.memory_space<vmem>>, vector<1x32xf32>
    %287 = vector.broadcast %286 : vector<1x32xf32> to vector<8x32xf32>
    %288 = arith.addf %285, %287 : vector<8x32xf32>
    %289 = arith.addf %276, %288 : vector<8x32xf32>
    %290 = vector.extract_strided_slice %8 {offsets = [6, 0], sizes = [1, 32], strides = [1, 1]} : vector<8x32xf32> to vector<1x32xf32>
    %291 = vector.extract_strided_slice %8 {offsets = [7, 0], sizes = [1, 32], strides = [1, 1]} : vector<8x32xf32> to vector<1x32xf32>
    %cst_109 = arith.constant dense<0.000000e+00> : vector<8xf32>
    %292 = vector.multi_reduction <add>, %289, %cst_109 [1] : vector<8x32xf32> to vector<8xf32>
    %293 = vector.shape_cast %292 : vector<8xf32> to vector<8x1xf32>
    %cst_110 = arith.constant 3.200000e+01 : f32
    %294 = vector.broadcast %cst_110 : f32 to vector<8x1xf32>
    %295 = arith.divf %293, %294 : vector<8x1xf32>
    %296 = vector.broadcast %295 : vector<8x1xf32> to vector<8x32xf32>
    %297 = arith.subf %289, %296 : vector<8x32xf32>
    %298 = arith.mulf %297, %297 : vector<8x32xf32>
    %cst_111 = arith.constant dense<0.000000e+00> : vector<8xf32>
    %299 = vector.multi_reduction <add>, %298, %cst_111 [1] : vector<8x32xf32> to vector<8xf32>
    %300 = vector.shape_cast %299 : vector<8xf32> to vector<8x1xf32>
    %cst_112 = arith.constant 3.200000e+01 : f32
    %301 = vector.broadcast %cst_112 : f32 to vector<8x1xf32>
    %302 = arith.divf %300, %301 : vector<8x1xf32>
    %303 = vector.broadcast %295 : vector<8x1xf32> to vector<8x32xf32>
    %304 = arith.subf %289, %303 : vector<8x32xf32>
    %cst_113 = arith.constant 9.99999974E-6 : f32
    %305 = vector.broadcast %cst_113 : f32 to vector<8x1xf32>
    %306 = arith.addf %302, %305 : vector<8x1xf32>
    %307 = math.rsqrt %306 : vector<8x1xf32>
    %308 = vector.broadcast %307 : vector<8x1xf32> to vector<8x32xf32>
    %309 = arith.mulf %304, %308 : vector<8x32xf32>
    %310 = vector.broadcast %290 : vector<1x32xf32> to vector<8x32xf32>
    %311 = arith.mulf %309, %310 : vector<8x32xf32>
    %312 = vector.broadcast %291 : vector<1x32xf32> to vector<8x32xf32>
    %313 = arith.addf %311, %312 : vector<8x32xf32>
    %c0_114 = arith.constant 0 : index
    %c0_115 = arith.constant 0 : index
    %314 = vector.load %arg20[%c0_114, %c0_115] : memref<32x64xf32, #tpu.memory_space<vmem>>, vector<32x64xf32>
    %cst_116 = arith.constant dense<0.000000e+00> : vector<8x64xf32>
    %315 = tpu.matmul %313, %314, %cst_116 {dimension_numbers = #tpu.dot_dimension_numbers<[1], [0], [0], [1], [0, 0, 1, 1], [], []>} : vector<8x32xf32>, vector<32x64xf32>, vector<8x64xf32> -> vector<8x64xf32>
    %c0_117 = arith.constant 0 : index
    %c0_118 = arith.constant 0 : index
    %316 = vector.load %arg21[%c0_117, %c0_118] : memref<1x64xf32, #tpu.memory_space<vmem>>, vector<1x64xf32>
    %317 = vector.broadcast %316 : vector<1x64xf32> to vector<8x64xf32>
    %318 = arith.addf %315, %317 : vector<8x64xf32>
    %c0_119 = arith.constant 0 : index
    %c0_120 = arith.constant 0 : index
    %c0_121 = arith.constant 0 : index
    %319 = vector.load %arg22[%c0_119, %c0_120, %c0_121] : memref<1x8x64xf32, #tpu.memory_space<vmem>>, vector<1x8x64xf32>
    %320 = vector.shape_cast %319 : vector<1x8x64xf32> to vector<8x64xf32>
    %321 = vector.shape_cast %318 : vector<8x64xf32> to vector<1x8x64xf32>
    tpu.vector_store %arg22[%c0_119, %c0_120, %c0_121], %321 {strides = array<i32>} : memref<1x8x64xf32, #tpu.memory_space<vmem>>, vector<1x8x64xf32>,
    return
  }
  func.func @transform_0(%arg0: i32) -> (i32, i32, i32) {
    %c0_i32 = arith.constant 0 : i32
    %c0_i32_0 = arith.constant 0 : i32
    %c0_i32_1 = arith.constant 0 : i32
    return %arg0, %c0_i32, %c0_i32_0 : i32, i32, i32
  }
  func.func @transform_1(%arg0: i32) -> (i32, i32, i32) {
    %c0_i32 = arith.constant 0 : i32
    %c0_i32_0 = arith.constant 0 : i32
    %c0_i32_1 = arith.constant 0 : i32
    return %arg0, %c0_i32, %c0_i32_0 : i32, i32, i32
  }
  func.func @transform_2(%arg0: i32) -> (i32, i32, i32) {
    %c0_i32 = arith.constant 0 : i32
    %c0_i32_0 = arith.constant 0 : i32
    %c0_i32_1 = arith.constant 0 : i32
    return %arg0, %c0_i32, %c0_i32_0 : i32, i32, i32
  }
  func.func @transform_3(%arg0: i32) -> (i32, i32, i32) {
    %c0_i32 = arith.constant 0 : i32
    %c0_i32_0 = arith.constant 0 : i32
    %c0_i32_1 = arith.constant 0 : i32
    return %arg0, %c0_i32, %c0_i32_0 : i32, i32, i32
  }
  func.func @transform_4(%arg0: i32) -> (i32, i32) {
    %c0_i32 = arith.constant 0 : i32
    %c0_i32_0 = arith.constant 0 : i32
    %c0_i32_1 = arith.constant 0 : i32
    return %c0_i32, %c0_i32_0 : i32, i32
  }
  func.func @transform_5(%arg0: i32) -> (i32, i32) {
    %c0_i32 = arith.constant 0 : i32
    %c0_i32_0 = arith.constant 0 : i32
    %c0_i32_1 = arith.constant 0 : i32
    return %c0_i32, %c0_i32_0 : i32, i32
  }
  func.func @transform_6(%arg0: i32) -> (i32, i32) {
    %c0_i32 = arith.constant 0 : i32
    %c0_i32_0 = arith.constant 0 : i32
    %c0_i32_1 = arith.constant 0 : i32
    return %c0_i32, %c0_i32_0 : i32, i32
  }
  func.func @transform_7(%arg0: i32) -> (i32, i32) {
    %c0_i32 = arith.constant 0 : i32
    %c0_i32_0 = arith.constant 0 : i32
    %c0_i32_1 = arith.constant 0 : i32
    return %c0_i32, %c0_i32_0 : i32, i32
  }
  func.func @transform_8(%arg0: i32) -> (i32, i32) {
    %c0_i32 = arith.constant 0 : i32
    %c0_i32_0 = arith.constant 0 : i32
    %c0_i32_1 = arith.constant 0 : i32
    return %c0_i32, %c0_i32_0 : i32, i32
  }
  func.func @transform_9(%arg0: i32) -> (i32, i32) {
    %c0_i32 = arith.constant 0 : i32
    %c0_i32_0 = arith.constant 0 : i32
    %c0_i32_1 = arith.constant 0 : i32
    return %c0_i32, %c0_i32_0 : i32, i32
  }
  func.func @transform_10(%arg0: i32) -> (i32, i32) {
    %c0_i32 = arith.constant 0 : i32
    %c0_i32_0 = arith.constant 0 : i32
    %c0_i32_1 = arith.constant 0 : i32
    return %c0_i32, %c0_i32_0 : i32, i32
  }
  func.func @transform_11(%arg0: i32) -> (i32, i32) {
    %c0_i32 = arith.constant 0 : i32
    %c0_i32_0 = arith.constant 0 : i32
    %c0_i32_1 = arith.constant 0 : i32
    return %c0_i32, %c0_i32_0 : i32, i32
  }
  func.func @transform_12(%arg0: i32) -> (i32, i32) {
    %c0_i32 = arith.constant 0 : i32
    %c0_i32_0 = arith.constant 0 : i32
    %c0_i32_1 = arith.constant 0 : i32
    return %c0_i32, %c0_i32_0 : i32, i32
  }
  func.func @transform_13(%arg0: i32) -> (i32, i32) {
    %c0_i32 = arith.constant 0 : i32
    %c0_i32_0 = arith.constant 0 : i32
    %c0_i32_1 = arith.constant 0 : i32
    return %c0_i32, %c0_i32_0 : i32, i32
  }
  func.func @transform_14(%arg0: i32) -> (i32, i32) {
    %c0_i32 = arith.constant 0 : i32
    %c0_i32_0 = arith.constant 0 : i32
    %c0_i32_1 = arith.constant 0 : i32
    return %c0_i32, %c0_i32_0 : i32, i32
  }
  func.func @transform_15(%arg0: i32) -> (i32, i32) {
    %c0_i32 = arith.constant 0 : i32
    %c0_i32_0 = arith.constant 0 : i32
    %c0_i32_1 = arith.constant 0 : i32
    return %c0_i32, %c0_i32_0 : i32, i32
  }
  func.func @transform_16(%arg0: i32) -> (i32, i32) {
    %c0_i32 = arith.constant 0 : i32
    %c0_i32_0 = arith.constant 0 : i32
    %c0_i32_1 = arith.constant 0 : i32
    return %c0_i32, %c0_i32_0 : i32, i32
  }
  func.func @transform_17(%arg0: i32) -> (i32, i32) {
    %c0_i32 = arith.constant 0 : i32
    %c0_i32_0 = arith.constant 0 : i32
    %c0_i32_1 = arith.constant 0 : i32
    return %c0_i32, %c0_i32_0 : i32, i32
  }
  func.func @transform_18(%arg0: i32) -> (i32, i32) {
    %c0_i32 = arith.constant 0 : i32
    %c0_i32_0 = arith.constant 0 : i32
    %c0_i32_1 = arith.constant 0 : i32
    return %c0_i32, %c0_i32_0 : i32, i32
  }
  func.func @transform_19(%arg0: i32) -> (i32, i32) {
    %c0_i32 = arith.constant 0 : i32
    %c0_i32_0 = arith.constant 0 : i32
    %c0_i32_1 = arith.constant 0 : i32
    return %c0_i32, %c0_i32_0 : i32, i32
  }
  func.func @transform_20(%arg0: i32) -> (i32, i32) {
    %c0_i32 = arith.constant 0 : i32
    %c0_i32_0 = arith.constant 0 : i32
    %c0_i32_1 = arith.constant 0 : i32
    return %c0_i32, %c0_i32_0 : i32, i32
  }
  func.func @transform_21(%arg0: i32) -> (i32, i32, i32) {
    %c0_i32 = arith.constant 0 : i32
    %c0_i32_0 = arith.constant 0 : i32
    %c0_i32_1 = arith.constant 0 : i32
    return %arg0, %c0_i32, %c0_i32_0 : i32, i32, i32
  }
}

</mosaic_0001>

<bundles_post_ra>
// kernel: rrg_2d_ct_forward.2
= control target key start
LH: loop header
LB: loop body
LE: loop exit
PB: predicated region body
PF: predicated region fallthrough
CT: control target
= control target key end

     0   :  { %s847_s21 = smov 0   ;;  %s1071_s0 = inlined_call_operand.vmem [shape: f32[8,256,27], index: 0, kind: input, shape index: {}]   ;;  %s1072_s1 = inlined_call_operand.vmem [shape: f32[27,32], index: 1, kind: input, shape index: {}]   ;;  %s1073_s2 = inlined_call_operand.vmem [shape: f32[1,32], index: 2, kind: input, shape index: {}]   ;;  %s1074_s3 = inlined_call_operand.vmem [shape: f32[32,32], index: 3, kind: input, shape index: {}]   ;;  %s1075_s4 = inlined_call_operand.vmem [shape: f32[1,32], index: 4, kind: input, shape index: {}]   ;;  %s1076_s5 = inlined_call_operand.vmem [shape: f32[8,1,32], index: 5, kind: output, shape index: {0}]   ;;  %s1077_s6 = inlined_call_operand.vmem [shape: f32[8,1,1], index: 6, kind: output, shape index: {1}]  }
   0x1 LB: > { %s732_s22 = sadd.s32 4294967295, %s808_s21   ;;  %p736_p0 = scmp.ge.s32.totalorder %s808_s21, 1  ;;  %s808_s21 = sphi %s847_s21, %s17_s21  }
   0x2   : > { %p215_p1 = scmp.lt.s32.totalorder %s808_s21, 9 }
   0x4   : > { %p216_p2 = pnand %p736_p0, %p215_p1 }
   0x5   : > { %p246_p3 = scmp.lt.s32.totalorder (!%p216_p2), %s732_s22, 7 }
   0x6   : > { %219 = sbr.rel (%p216_p2) target bundleno = 520 (0x208), region = 40 }
   0xb   : > { %v292_v0 = vld [vmem:[%s1072_s1 + $0x18] sm:$0x7]  ;;  %vm394_vm0 = vcmask 1042432   ;;  %v291_v1 = vld [vmem:[%s1072_s1 + $0x10] sm:$0xff]  ;;  %v290_v2 = vld [vmem:[%s1072_s1 + $0x8] sm:$0xff]  ;;  %s1079_s22 = smov (!%p246_p3, %s732_s22), 7 }
   0xc   : > { %739 = vmatpush.msk.msra.mxu0 %vm394_vm0, %v292_v0  ;;  %778 = vmatpush.msk.msra.mxu2 %vm394_vm0, %v292_v0  ;;  %v289_v3 = vld [vmem:[%s1072_s1] sm:$0xff]  ;;  %s776_s7 = sshll.u32 %s1079_s22, 8  ;;  %vm297_vm1 = vcmask 220160   ;;  %vm543_vm2 = vcmask 261120   ;;  %s253_s27 = scalar_lea.vmem %s1076_s5, %s1079_s22  ;;  %vm649_vm4 = vcmask 253952   ;;  %vm658_vm5 = vcmask 0  }
   0xd   : > { %777 = vmatpush.msk.msra.mxu1 %vm394_vm0, %v292_v0  ;;  %779 = vmatpush.msk.msra.mxu3 %vm394_vm0, %v292_v0  ;;  %s873_s10 = scalar_lea.vmem %s1071_s0, %s776_s7  ;;  %v956_v51 = vld [vmem:[%s1073_s2] ss:$0 sm:$0xff]  ;;  %s256_s30 = scalar_lea.vmem %s1077_s6, %s1079_s22 }
   0xe   : > { %411 = vmatpush.msra.mxu0 %v291_v1  ;;  %781 = vmatpush.msra.mxu2 %v291_v1  ;;  %v257_v4 = vld [vmem:[%s873_s10] sm:$0xff]  ;;  %v271_v5 = vld [vmem:[%s873_s10 + $0x70] sm:$0xff]  ;;  %v280_v7 = vld [vmem:[%s873_s10 + $0xb8] sm:$0xff] }
   0xf   : > { %780 = vmatpush.msra.mxu1 %v291_v1  ;;  %782 = vmatpush.msra.mxu3 %v291_v1  ;;  %v265_v6 = vld [vmem:[%s873_s10 + $0x40] sm:$0xff]  ;;  %v258_v8 = vld [vmem:[%s873_s10 + $0x8] sm:$0xff]  ;;  %v272_v9 = vld [vmem:[%s873_s10 + $0x78] sm:$0xff] }
  0x10   : > { %412 = vmatpush.msra.mxu0 %v290_v2  ;;  %784 = vmatpush.msra.mxu2 %v290_v2  ;;  %v266_v10 = vld [vmem:[%s873_s10 + $0x48] sm:$0xff]  ;;  %v281_v11 = vld [vmem:[%s873_s10 + $0xc0] sm:$0xff]  ;;  %v259_v12 = vld [vmem:[%s873_s10 + $0x10] sm:$0xff] }
  0x11   : > { %783 = vmatpush.msra.mxu1 %v290_v2  ;;  %785 = vmatpush.msra.mxu3 %v290_v2  ;;  %v273_v13 = vld [vmem:[%s873_s10 + $0x80] sm:$0xff]  ;;  %v267_v14 = vld [vmem:[%s873_s10 + $0x50] sm:$0xff]  ;;  %v282_v15 = vld [vmem:[%s873_s10 + $0xc8] sm:$0xff] }
  0x12   : > { %413 = vmatpush.msra.mxu0 %v289_v3  ;;  %787 = vmatpush.msra.mxu2 %v289_v3  ;;  %v260_v16 = vld [vmem:[%s873_s10 + $0x18] sm:$0xff]  ;;  %v274_v17 = vld [vmem:[%s873_s10 + $0x88] sm:$0xff]  ;;  %v283_v19 = vld [vmem:[%s873_s10 + $0xd0] sm:$0xff] }
  0x13   : > { %740 = vmatmul.msk.f32.vlgmr.msra.gmra.mxu0 %vm297_vm1, %v257_v4  ;;  %754 = vmatmul.msk.f32.vlgmr.msra.gmra.mxu2 %vm297_vm1, %v271_v5  ;;  %v268_v18 = vld [vmem:[%s873_s10 + $0x58] sm:$0xff]  ;;  %v261_v20 = vld [vmem:[%s873_s10 + $0x20] sm:$0xff]  ;;  %v275_v21 = vld [vmem:[%s873_s10 + $0x90] sm:$0xff] }
  0x14   : > { %786 = vmatpush.msra.mxu1 %v289_v3  ;;  %788 = vmatpush.msra.mxu3 %v289_v3  ;;  %v269_v22 = vld [vmem:[%s873_s10 + $0x60] sm:$0xff]  ;;  %v284_v23 = vld [vmem:[%s873_s10 + $0xd8] sm:$0xff]  ;;  %v262_v24 = vld [vmem:[%s873_s10 + $0x28] sm:$0xff] }
  0x15   : > { %748 = vmatmul.msk.f32.vlgmr.msra.gmra.mxu1 %vm297_vm1, %v265_v6  ;;  %763 = vmatmul.msk.f32.vlgmr.msra.gmra.mxu3 %vm297_vm1, %v280_v7  ;;  %v276_v25 = vld [vmem:[%s873_s10 + $0x98] sm:$0xff]  ;;  %v270_v26 = vld [vmem:[%s873_s10 + $0x68] sm:$0xff]  ;;  %v285_v27 = vld [vmem:[%s873_s10 + $0xe0] sm:$0xff] }
  0x16   : > { %v263_v28 = vld [vmem:[%s873_s10 + $0x30] sm:$0xff]  ;;  %v277_v29 = vld [vmem:[%s873_s10 + $0xa0] sm:$0xff]  ;;  %v286_v30 = vld [vmem:[%s873_s10 + $0xe8] sm:$0xff] }
  0x17   : > { %v264_v31 = vld [vmem:[%s873_s10 + $0x38] sm:$0xff]  ;;  %v278_v32 = vld [vmem:[%s873_s10 + $0xa8] sm:$0xff]  ;;  %v287_v33 = vld [vmem:[%s873_s10 + $0xf0] sm:$0xff] }
  0x18   : > { %v279_v34 = vld [vmem:[%s873_s10 + $0xb0] sm:$0xff]  ;;  %v288_v35 = vld [vmem:[%s873_s10 + $0xf8] sm:$0xff] }
  0x1b   : > { %741 = vmatmul.msk.f32.gmra.mxu0 %vm297_vm1, %v258_v8  ;;  %755 = vmatmul.msk.f32.gmra.mxu2 %vm297_vm1, %v272_v9 }
  0x1d   : > { %749 = vmatmul.msk.f32.gmra.mxu1 %vm297_vm1, %v266_v10  ;;  %764 = vmatmul.msk.f32.gmra.mxu3 %vm297_vm1, %v281_v11 }
  0x23   : > { %742 = vmatmul.msk.f32.gmra.mxu0 %vm297_vm1, %v259_v12  ;;  %756 = vmatmul.msk.f32.gmra.mxu2 %vm297_vm1, %v273_v13 }
  0x25   : > { %750 = vmatmul.msk.f32.gmra.mxu1 %vm297_vm1, %v267_v14  ;;  %765 = vmatmul.msk.f32.gmra.mxu3 %vm297_vm1, %v282_v15 }
  0x2b   : > { %743 = vmatmul.msk.f32.gmra.mxu0 %vm297_vm1, %v260_v16  ;;  %757 = vmatmul.msk.f32.gmra.mxu2 %vm297_vm1, %v274_v17 }
  0x2d   : > { %751 = vmatmul.msk.f32.gmra.mxu1 %vm297_vm1, %v268_v18  ;;  %766 = vmatmul.msk.f32.gmra.mxu3 %vm297_vm1, %v283_v19 }
  0x33   : > { %744 = vmatmul.msk.f32.gmra.mxu0 %vm297_vm1, %v261_v20  ;;  %758 = vmatmul.msk.f32.gmra.mxu2 %vm297_vm1, %v275_v21 }
  0x35   : > { %752 = vmatmul.msk.f32.gmra.mxu1 %vm297_vm1, %v269_v22  ;;  %767 = vmatmul.msk.f32.gmra.mxu3 %vm297_vm1, %v284_v23 }
  0x3b   : > { %745 = vmatmul.msk.f32.gmra.mxu0 %vm297_vm1, %v262_v24  ;;  %759 = vmatmul.msk.f32.gmra.mxu2 %vm297_vm1, %v276_v25 }
  0x3d   : > { %753 = vmatmul.msk.f32.gmra.mxu1 %vm297_vm1, %v270_v26  ;;  %768 = vmatmul.msk.f32.gmra.mxu3 %vm297_vm1, %v285_v27  ;;  %v624_v27 = vld [vmem:[%s1074_s3 + $0x18] sm:$0xff] }
  0x3e   : > { %641 = vmatpush.msrb.mxu1 %v624_v27 }
  0x43   : > { %746 = vmatmul.msk.f32.gmra.mxu0 %vm297_vm1, %v263_v28  ;;  %760 = vmatmul.msk.f32.gmra.mxu2 %vm297_vm1, %v277_v29 }
  0x45   : > { %769 = vmatmul.msk.f32.gmra.mxu3 %vm297_vm1, %v286_v30 }
  0x4b   : > { %747 = vmatmul.msk.f32.gmra.mxu0 %vm297_vm1, %v264_v31  ;;  %761 = vmatmul.msk.f32.gmra.mxu2 %vm297_vm1, %v278_v32 }
  0x4d   : > { %770 = vmatmul.msk.f32.gmra.mxu3 %vm297_vm1, %v287_v33 }
  0x53   : > { %762 = vmatmul.msk.f32.gmra.mxu2 %vm297_vm1, %v279_v34 }
  0x55   : > { %771 = vmatmul.msk.f32.gmra.mxu3 %vm297_vm1, %v288_v35 }
  0x90   : > { %v415_v36 = vpop.f32.mrf.mxu0 }
  0x91   : > { %v416_v56 = vadd.f32 %v956_v51, %v415_v36 }
  0x92   : > { %v439_v39 = vpop.f32.mrf.mxu1 }
  0x93   : > { %v511_v60 = vmax.f32 %v416_v56, 0.0  ;;  %v440_v17 = vadd.f32 %v956_v51, %v439_v39 }
  0x95   : > { %v544_v5 = vsel %vm543_vm2, %v511_v60, 0.0  ;;  %v519_v28 = vmax.f32 %v440_v17, 0.0 }
  0x96   : > { %v939_v37 = vpop.f32.mrf.mxu2 }
  0x98   : > { %v418_v38 = vpop.f32.mrf.mxu0  ;;  %v943_v42 = vpop.f32.mrf.mxu3 }
  0x99   : > { %v419_v53 = vadd.f32 %v956_v51, %v418_v38  ;;  %v559_v38 = vsel %vm543_vm2, %v519_v28, 0.0 }
  0x9a   : > { %v442_v43 = vpop.f32.mrf.mxu1 }
  0x9b   : > { %v512_v58 = vmax.f32 %v419_v53, 0.0  ;;  %v443_v22 = vadd.f32 %v956_v51, %v442_v43 }
  0x9d   : > { %v545_v0 = vsel %vm543_vm2, %v512_v58, 0.0  ;;  %v520_v33 = vmax.f32 %v443_v22, 0.0 }
  0x9e   : > { %v941_v40 = vpop.f32.mrf.mxu2  ;;  %v546_v9 = vadd.f32 %v545_v0, %v544_v5 }
  0xa0   : > { %v421_v41 = vpop.f32.mrf.mxu0  ;;  %v947_v46 = vpop.f32.mrf.mxu3 }
  0xa1   : > { %v422_v57 = vadd.f32 %v956_v51, %v421_v41 }
  0xa2   : > { %v445_v47 = vpop.f32.mrf.mxu1 }
  0xa3   : > { %v513_v61 = vmax.f32 %v422_v57, 0.0  ;;  %v446_v29 = vadd.f32 %v956_v51, %v445_v47  ;;  %v561_v47 = vsel %vm543_vm2, %v520_v33, 0.0 }
  0xa5   : > { %v547_v6 = vsel %vm543_vm2, %v513_v61, 0.0  ;;  %v521_v39 = vmax.f32 %v446_v29, 0.0  ;;  %v461_v61 = vadd.f32 %v956_v51, %v941_v40  ;;  %v623_v40 = vld [vmem:[%s1074_s3 + $0x10] sm:$0xff] }
  0xa6   : > { %v945_v44 = vpop.f32.mrf.mxu2  ;;  %v548_v13 = vadd.f32 %v547_v6, %v546_v9  ;;  %642 = vmatpush.msrb.mxu1 %v623_v40 }
  0xa7   : > { %v563_v56 = vsel %vm543_vm2, %v521_v39, 0.0  ;;  %v526_v6 = vmax.f32 %v461_v61, 0.0  ;;  %v621_v39 = vld [vmem:[%s1074_s3] sm:$0xff] }
  0xa8   : > { %v424_v45 = vpop.f32.mrf.mxu0  ;;  %v951_v50 = vpop.f32.mrf.mxu3 }
  0xa9   : > { %v425_v59 = vadd.f32 %v956_v51, %v424_v45 }
  0xaa   : > { %v448_v55 = vpop.f32.mrf.mxu1 }
  0xab   : > { %v514_v1 = vmax.f32 %v425_v59, 0.0  ;;  %v449_v34 = vadd.f32 %v956_v51, %v448_v55  ;;  %v458_v55 = vadd.f32 %v956_v51, %v939_v37 }
  0xad   : > { %v549_v11 = vsel %vm543_vm2, %v514_v1, 0.0  ;;  %v525_v1 = vmax.f32 %v458_v55, 0.0 }
  0xae   : > { %v949_v48 = vpop.f32.mrf.mxu2  ;;  %v550_v16 = vadd.f32 %v549_v11, %v548_v13  ;;  %v622_v13 = vld [vmem:[%s1074_s3 + $0x8] sm:$0xff] }
  0xaf   : > { %v571_v9 = vsel %vm543_vm2, %v525_v1, 0.0  ;;  %643 = vmatpush.msrb.mxu1 %v622_v13 }
  0xb0   : > { %v427_v49 = vpop.f32.mrf.mxu0  ;;  %v965_v63 = vpop.f32.mrf.mxu3 }
  0xb1   : > { %v428_v62 = vadd.f32 %v956_v51, %v427_v49  ;;  %v522_v49 = vmax.f32 %v449_v34, 0.0  ;;  %644 = vmatpush.msrb.mxu1 %v621_v39 }
  0xb2   : > { %v451_v10 = vpop.f32.mrf.mxu1 }
  0xb3   : > { %v515_v7 = vmax.f32 %v428_v62, 0.0  ;;  %v452_v41 = vadd.f32 %v956_v51, %v451_v10  ;;  %v565_v62 = vsel %vm543_vm2, %v522_v49, 0.0 }
  0xb5   : > { %v551_v14 = vsel %vm543_vm2, %v515_v7, 0.0  ;;  %v523_v57 = vmax.f32 %v452_v41, 0.0  ;;  %v467_v7 = vadd.f32 %v956_v51, %v949_v48  ;;  %v573_v48 = vsel %vm543_vm2, %v526_v6, 0.0 }
  0xb6   : > { %v958_v52 = vpop.f32.mrf.mxu2  ;;  %v552_v19 = vadd.f32 %v551_v14, %v550_v16 }
  0xb7   : > { %v528_v14 = vmax.f32 %v467_v7, 0.0 }
  0xb8   : > { %v430_v54 = vpop.f32.mrf.mxu0  ;;  %v978_v21 = vpop.f32.mrf.mxu3 }
  0xb9   : > { %v431_v2 = vadd.f32 %v956_v51, %v430_v54  ;;  %v577_v22 = vsel %vm543_vm2, %v528_v14, 0.0 }
  0xba   : > { %v454_v32 = vpop.f32.mrf.mxu1 }
  0xbb   : > { %v516_v12 = vmax.f32 %v431_v2, 0.0  ;;  %v455_v43 = vadd.f32 %v956_v51, %v454_v32  ;;  %v464_v2 = vadd.f32 %v956_v51, %v945_v44  ;;  %v470_v44 = vadd.f32 %v956_v51, %v958_v52 }
  0xbd   : > { %v553_v18 = vsel %vm543_vm2, %v516_v12, 0.0  ;;  %v524_v58 = vmax.f32 %v455_v43, 0.0  ;;  %v527_v10 = vmax.f32 %v464_v2, 0.0 }
  0xbe   : > { %v969_v4 = vpop.f32.mrf.mxu2  ;;  %v554_v25 = vadd.f32 %v553_v18, %v552_v19  ;;  %v529_v19 = vmax.f32 %v470_v44, 0.0 }
  0xbf   : > { %v569_v37 = vsel %vm543_vm2, %v524_v58, 0.0  ;;  %v575_v18 = vsel %vm543_vm2, %v527_v10, 0.0 }
  0xc0   : > { %v433_v3 = vpop.f32.mrf.mxu0  ;;  %v993_v54 = vpop.f32.mrf.mxu3  ;;  %v579_v28 = vsel %vm543_vm2, %v529_v19, 0.0 }
  0xc1   : > { %v434_v8 = vadd.f32 %v956_v51, %v433_v3  ;;  %v567_v3 = vsel %vm543_vm2, %v523_v57, 0.0  ;;  %v497_v57 = vadd.f32 %v956_v51, %v978_v21 }
  0xc3   : > { %v517_v15 = vmax.f32 %v434_v8, 0.0  ;;  %v538_v1 = vmax.f32 %v497_v57, 0.0 }
  0xc5   : > { %v555_v23 = vsel %vm543_vm2, %v517_v15, 0.0  ;;  %v473_v15 = vadd.f32 %v956_v51, %v969_v4 }
  0xc6   : > { %v475_v26 = vpop.f32.mrf.mxu2  ;;  %v556_v31 = vadd.f32 %v555_v23, %v554_v25 }
  0xc7   : > { %v476_v52 = vadd.f32 %v956_v51, %v475_v26  ;;  %v530_v23 = vmax.f32 %v473_v15, 0.0 }
  0xc8   : > { %v436_v20 = vpop.f32.mrf.mxu0  ;;  %v502_v12 = vpop.f32.mrf.mxu3 }
  0xc9   : > { %v437_v24 = vadd.f32 %v956_v51, %v436_v20  ;;  %v531_v4 = vmax.f32 %v476_v52, 0.0  ;;  %v503_v2 = vadd.f32 %v956_v51, %v502_v12 }
  0xcb   : > { %v518_v30 = vmax.f32 %v437_v24, 0.0 }
  0xcd   : > { %v557_v35 = vsel %vm543_vm2, %v518_v30, 0.0  ;;  %v485_v30 = vadd.f32 %v956_v51, %v943_v42  ;;  %v491_v42 = vadd.f32 %v956_v51, %v951_v50 }
  0xce   : > { %v558_v36 = vadd.f32 %v557_v35, %v556_v31  ;;  %v478_v60 = vpop.f32.mrf.mxu2  ;;  %v581_v31 = vsel %vm543_vm2, %v530_v23, 0.0  ;;  %v488_v35 = vadd.f32 %v956_v51, %v947_v46  ;;  %v494_v46 = vadd.f32 %v956_v51, %v965_v63 }
  0xcf   : > { %v479_v24 = vadd.f32 %v956_v51, %v478_v60  ;;  %v534_v41 = vmax.f32 %v485_v30, 0.0  ;;  %v500_v60 = vadd.f32 %v956_v51, %v993_v54  ;;  %v597_v54 = vsel %vm543_vm2, %v538_v1, 0.0 }
  0xd0   : > { %v560_v45 = vadd.f32 %v559_v38, %v558_v36  ;;  %v505_v34 = vpop.f32.mrf.mxu3  ;;  %v583_v36 = vsel %vm543_vm2, %v531_v4, 0.0  ;;  %v535_v49 = vmax.f32 %v488_v35, 0.0 }
  0xd1   : > { %v532_v32 = vmax.f32 %v479_v24, 0.0  ;;  %v589_v55 = vsel %vm543_vm2, %v534_v41, 0.0  ;;  %v539_v21 = vmax.f32 %v500_v60, 0.0 }
  0xd2   : > { %v562_v53 = vadd.f32 %v561_v47, %v560_v45  ;;  %v591_v50 = vsel %vm543_vm2, %v535_v49, 0.0 }
  0xd3   : > { %v585_v43 = vsel %vm543_vm2, %v532_v32, 0.0  ;;  %v599_v10 = vsel %vm543_vm2, %v539_v21, 0.0 }
  0xd4   : > { %v564_v59 = vadd.f32 %v563_v56, %v562_v53  ;;  %v536_v56 = vmax.f32 %v491_v42, 0.0 }
  0xd6   : > { %v566_v0 = vadd.f32 %v565_v62, %v564_v59  ;;  %v481_v17 = vpop.f32.mrf.mxu2  ;;  %v537_v59 = vmax.f32 %v494_v46, 0.0  ;;  %v593_v63 = vsel %vm543_vm2, %v536_v56, 0.0 }
  0xd7   : > { %v482_v25 = vadd.f32 %v956_v51, %v481_v17 }
  0xd8   : > { %v568_v5 = vadd.f32 %v567_v3, %v566_v0  ;;  %v508_v62 = vpop.f32.mrf.mxu3  ;;  %v810_v0 = vmov 256.0  }
  0xd9   : > { %v533_v26 = vmax.f32 %v482_v25, 0.0  ;;  %800 = vrcp.f32 %v810_v0  ;;  %v509_v6 = vadd.f32 %v956_v51, %v508_v62 }
  0xda   : > { %v570_v8 = vadd.f32 %v569_v37, %v568_v5  ;;  %v595_v37 = vsel %vm543_vm2, %v537_v59, 0.0  ;;  %v506_v5 = vadd.f32 %v956_v51, %v505_v34  ;;  %v811_v34 = vmov 0.0  }
  0xdb   : > { %v587_v45 = vsel %vm543_vm2, %v533_v26, 0.0 }
  0xdc   : > { %v572_v11 = vadd.f32 %v571_v9, %v570_v8  ;;  %v540_v8 = vmax.f32 %v503_v2, 0.0  ;;  %v541_v44 = vmax.f32 %v506_v5, 0.0 }
  0xde   : > { %v574_v16 = vadd.f32 %v573_v48, %v572_v11  ;;  %v542_v11 = vmax.f32 %v509_v6, 0.0  ;;  %v601_v12 = vsel %vm543_vm2, %v540_v8, 0.0  ;;  %v603_v15 = vsel %vm543_vm2, %v541_v44, 0.0 }
  0xdf   : > { %v801_v40 = vpop.eup %800 }
  0xe0   : > { %v576_v20 = vadd.f32 %v575_v18, %v574_v16  ;;  %v614_v48 = vmul.f32 256.0, %v801_v40  ;;  %v605_v16 = vsel %vm543_vm2, %v542_v11, 0.0  ;;  %vm618_vm3 = vweird.f32 %v801_v40 }
  0xe2   : > { %v578_v27 = vadd.f32 %v577_v22, %v576_v20  ;;  %v615_v17 = vsub.f32 1.0, %v614_v48 }
  0xe4   : > { %v580_v29 = vadd.f32 %v579_v28, %v578_v27  ;;  %v616_v52 = vmul.f32 %v801_v40, %v615_v17 }
  0xe6   : > { %v582_v33 = vadd.f32 %v581_v31, %v580_v29  ;;  %v617_v23 = vadd.f32 %v801_v40, %v616_v52  ;;  %v625_v29 = vld [vmem:[%s1075_s4] sm:$0x1] }
  0xe8   : > { %v584_v38 = vadd.f32 %v583_v36, %v582_v33  ;;  %v619_v27 = vsel %vm618_vm3, %v801_v40, %v617_v23 }
  0xea   : > { %v586_v47 = vadd.f32 %v585_v43, %v584_v38 }
  0xec   : > { %v588_v53 = vadd.f32 %v587_v45, %v586_v47 }
  0xee   : > { %v590_v58 = vadd.f32 %v589_v55, %v588_v53 }
  0xf0   : > { %v592_v61 = vadd.f32 %v591_v50, %v590_v58 }
  0xf2   : > { %v594_v3 = vadd.f32 %v593_v63, %v592_v61 }
  0xf4   : > { %v596_v7 = vadd.f32 %v595_v37, %v594_v3 }
  0xf6   : > { %v598_v9 = vadd.f32 %v597_v54, %v596_v7 }
  0xf8   : > { %v600_v13 = vadd.f32 %v599_v10, %v598_v9 }
  0xfa   : > { %v602_v14 = vadd.f32 %v601_v12, %v600_v13 }
  0xfc   : > { %v604_v51 = vadd.f32 %v603_v15, %v602_v14 }
  0xfe   : > { %v606_v18 = vadd.f32 %v605_v16, %v604_v51 }
 0x100   : > { %v607_v19 = vrot.slane %v606_v18, 4 }
 0x102   : > { %v608_v20 = vadd.f32 %v607_v19, %v606_v18 }
 0x104   : > { %v609_v22 = vrot.slane %v608_v20, 2 }
 0x106   : > { %v610_v24 = vadd.f32 %v609_v22, %v608_v20 }
 0x108   : > { %v611_v25 = vrot.slane %v610_v24, 1 }
 0x10a   : > { %v612_v28 = vadd.f32 %v611_v25, %v610_v24 }
 0x10c   : > { %v620_v4 = vmul.f32 %v619_v27, %v612_v28 }
 0x10e   : > { %772 = vmatmul.msk.f32.vlgmr.msrb.gmra.mxu1 %vm543_vm2, %v620_v4 }
 0x18b   : > { %v646_v30 = vpop.f32.mrf.mxu1 }
 0x18c   : > { %v647_v31 = vadd.f32 %v646_v30, %v625_v29 }
 0x18e   : > { %650 = vst.msk [vmem:[%s253_s27] sm:$0x1] %vm649_vm4, %v647_v31  ;;  %v651_v32 = vand.u32 2147483647, %v647_v31 }
 0x190   : > { %v652_v26 = vsel %vm649_vm4, %v651_v32, 0.0 }
 0x191   : > { %653 = vadd.xlane.f32.xlu0 %v652_v26 }
 0x204   : > { %v654_v33 = vpop.xlane.xlu0 %653 }
 0x205   : > { %vm655_vm6 = vcmp.ne.f32.partialorder %v654_v33, 0.0 }
 0x206   : > { %v773_v35 = vsel %vm655_vm6, 1.0, %v811_v34 }
 0x207   : > { %659 = vst.msk [vmem:[%s256_s30] sm:$0x1] %vm658_vm5, %v773_v35 }
 0x208 PF: > { %s17_s21 = sadd.s32 1, %s808_s21  }
 0x209   : > { %p14_p4 = scmp.ge.s32.totalorder %s17_s21, 10  }
 0x20b   :  { %16 = sbr.rel (!%p14_p4) target bundleno = 1 (0x1), region = 82 }

// kernel: rrg_2d_ct_forward.3
= control target key start
LH: loop header
LB: loop body
LE: loop exit
PB: predicated region body
PF: predicated region fallthrough
CT: control target
= control target key end

     0   :  { %s2598_s0 = inlined_call_operand.vmem [shape: f32[2,8,32], index: 0, kind: input, shape index: {}]   ;;  %s2599_s1 = inlined_call_operand.vmem [shape: f32[2,8,8], index: 1, kind: input, shape index: {}]   ;;  %s2600_s2 = inlined_call_operand.vmem [shape: f32[2,4,32], index: 2, kind: input, shape index: {}]   ;;  %s2601_s3 = inlined_call_operand.vmem [shape: f32[2,8,4], index: 3, kind: input, shape index: {}]   ;;  %s2602_s4 = inlined_call_operand.vmem [shape: f32[8,32], index: 4, kind: input, shape index: {}]   ;;  %s2603_s5 = inlined_call_operand.vmem [shape: f32[32,96], index: 5, kind: input, shape index: {}]   ;;  %s2604_s6 = inlined_call_operand.vmem [shape: f32[1,96], index: 6, kind: input, shape index: {}]   ;;  %s2605_s7 = inlined_call_operand.vmem [shape: f32[32,32], index: 7, kind: input, shape index: {}]   ;;  %s2606_s8 = inlined_call_operand.vmem [shape: f32[1,32], index: 8, kind: input, shape index: {}]   ;;  %s2607_s9 = inlined_call_operand.vmem [shape: f32[32,32], index: 9, kind: input, shape index: {}]   ;;  %s2608_s10 = inlined_call_operand.vmem [shape: f32[1,32], index: 10, kind: input, shape index: {}]   ;;  %s2609_s11 = inlined_call_operand.vmem [shape: f32[32,64], index: 11, kind: input, shape index: {}]   ;;  %s2610_s12 = inlined_call_operand.vmem [shape: f32[1,64], index: 12, kind: input, shape index: {}]   ;;  %s2611_s13 = inlined_call_operand.vmem [shape: f32[32,32], index: 13, kind: input, shape index: {}]   ;;  %s2612_s14 = inlined_call_operand.vmem [shape: f32[1,32], index: 14, kind: input, shape index: {}]   ;;  %s2613_s15 = inlined_call_operand.vmem [shape: f32[32,64], index: 15, kind: input, shape index: {}]   ;;  %s2614_s16 = inlined_call_operand.vmem [shape: f32[1,64], index: 16, kind: input, shape index: {}]   ;;  %s2615_s17 = inlined_call_operand.vmem [shape: f32[64,32], index: 17, kind: input, shape index: {}]   ;;  %s2616_s18 = inlined_call_operand.vmem [shape: f32[1,32], index: 18, kind: input, shape index: {}]   ;;  %s2617_s19 = inlined_call_operand.vmem [shape: f32[32,64], index: 19, kind: input, shape index: {}]   ;;  %s2618_s20 = inlined_call_operand.vmem [shape: f32[1,64], index: 20, kind: input, shape index: {}]   ;;  %s2619_s21 = inlined_call_operand.hbm [shape: f32[2,8,64], index: 21, kind: output, shape index: {}]  }
   0x1   :  { %2638 = sst [smem:[#allocation11_spill]] %s2598_s0 }
   0x2   :  { %2639 = sst [smem:[#allocation12_spill]] %s2599_s1 }
   0x3   :  { %2640 = sst [smem:[#allocation13_spill]] %s2600_s2 }
   0x4   :  { %2641 = sst [smem:[#allocation14_spill]] %s2601_s3 }
   0x5   :  { %2642 = sst [smem:[#allocation15_spill]] %s2602_s4 }
   0x6   :  { %2643 = sst [smem:[#allocation16_spill]] %s2603_s5 }
   0x7   :  { %2644 = sst [smem:[#allocation17_spill]] %s2604_s6 }
   0x8   :  { %2645 = sst [smem:[#allocation18_spill]] %s2605_s7 }
   0x9   :  { %2646 = sst [smem:[#allocation19_spill]] %s2606_s8 }
   0xa   :  { %26 = vsyncpa [#allocation3], 0 }
   0xb   :  { %28 = vsyncpa [#allocation3 + $0x1], 0  ;;  %s2215_s2 = smov 0   ;;  %s2217_s25 = smov 0  }
   0xc   :  { %s2219_s26 = smov 0   ;;  %s2221_s27 = smov 0  }
   0xd LB: > { %2647 = sst [smem:[#allocation5_spill]] %s2079_s2  ;;  %s2236_s3 = sadd.s32 4294967295, %s2091_s27   ;;  %s2091_s27 = sphi %s2221_s27, %s2674_s27   ;;  %s2087_s26 = sphi %s2219_s26, %s2676_s26   ;;  %s2083_s25 = sphi %s2217_s25, %s2678_s25   ;;  %s2079_s2 = sphi %s2215_s2, %s2677_s2  }
   0xe   : > { %2648 = sst [smem:[#allocation6_spill]] %s2087_s26  ;;  %s1873_s28 = sadd.s32 4294967294, %s2091_s27  }
   0xf   : > { %2649 = sst [smem:[#allocation7_spill]] %s2091_s27  ;;  %s2240_s29 = sadd.s32 1, %s2091_s27  }
  0x10   : > { %2650 = sst [smem:[#allocation8_spill]] %s2240_s29  ;;  %s502_s0 = sadd.s32 1, %s2087_s26 }
  0x11   : > { %s499_s4 = ssub.s32 %s2091_s27, %s2240_s29  ;;  %p512_p0 = scmp.ne.s32.totalorder %s2087_s26, %s2083_s25 }
  0x12   : > { %p500_p1 = scmp.eq.s32.totalorder %s499_s4, 0  ;;  %p513_p2 = scmp.eq.s32.totalorder %s2236_s3, 1 }
  0x13   : > { %p518_p3 = scmp.ne.s32.totalorder %s2083_s25, %s2079_s2  ;;  %p519_p4 = scmp.eq.s32.totalorder %s1873_s28, 1 }
  0x14   : > { %s2251_s30 = scalar_select %p500_p1, %s2087_s26, %s502_s0  }
  0x15   : > { %p2253_p5 = por %p513_p2, %p512_p0  ;;  %p2257_p6 = por %p519_p4, %p518_p3 }
  0x16   : > { %2651 = sst [smem:[#allocation9_spill]] %s2251_s30  ;;  %p1876_p7 = scmp.ge.s32.totalorder %s2091_s27, 1 }
  0x17   : > { %s2653_s22 = scalar_select %p2257_p6, 1, 0 }
  0x18   : > { %p616_p8 = scmp.lt.s32.totalorder %s2091_s27, 3 }
  0x19   : > { %2654 = sst [smem:[#allocation10_spill]] %s2653_s22 }
  0x1a   : > { %p617_p9 = pnand %p1876_p7, %p616_p8 }
  0x1b   : > { %p687_p10 = scmp.lt.s32.totalorder (!%p617_p9), %s2236_s3, 1  ;;  %s2655_s0 = sld [smem:[#allocation11_spill]] (!%p617_p9) }
  0x1c   : > { %620 = sbr.rel (%p617_p9) target bundleno = 4251 (0x109b), region = 104  ;;  %s2657_s30 = sld [smem:[#allocation15_spill]] (!%p617_p9) }
  0x1d   : > { %s2658_s6 = sld [smem:[#allocation17_spill]] (!%p617_p9)  ;;  %s2628_s24 = smov (!%p617_p9), 88  }
  0x1e   : > { %s2635_s28 = smov (!%p617_p9), 96   ;;  %s2626_s26 = smov (!%p617_p9), 80  }
  0x1f   : > { %s2659_s2 = sld [smem:[#allocation12_spill]] (!%p617_p9)  ;;  %s2631_s29 = smov (!%p617_p9), 120  }
  0x20   : > { %s2660_s7 = sld [smem:[#allocation18_spill]] (!%p617_p9)  ;;  %s2668_s27 = smov (!%p617_p9), 88  }
  0x21   : > { %s2265_s23 = scalar_select %p687_p10, %s2236_s3, 1  ;;  %vm708_vm0 = vcmask 261120   ;;  %v2093_v2 = vmov 32.0   ;;  %vm781_vm5 = vcmask 64512   ;;  %vm1283_vm9 = vcmask 1043456  }
  0x22   : > { %1987 = vrcp.f32 %v2093_v2  ;;  %v2295_v26 = vld [vmem:[%s2657_s30] sm:$0xff]  ;;  %s2629_s30 = smov 104   ;;  %s2661_s8 = sld [smem:[#allocation19_spill]]  ;;  %vm1266_vm10 = vcmask 31744   ;;  %vm1679_vm14 = vcmask 523264  }
  0x23   : > { %s2268_s1 = sshll.u32 %s2265_s23, 3  ;;  %v738_v28 = vperm.slane %v2295_v26, 0  ;;  %v740_v31 = vperm.slane %v2295_v26, 1  ;;  %v1979_v34 = vld [vmem:[%s2658_s6] ss:$0 sm:$0xff]  ;;  %s2662_s6 = sld [smem:[#allocation13_spill]] }
  0x24   : > { %s690_s4 = scalar_lea.vmem %s2655_s0, %s2268_s1  ;;  %s2656_s0 = sld [smem:[#allocation16_spill]] }
  0x25   : > { %v703_v0 = vld [vmem:[%s690_s4] sm:$0xff]  ;;  %s2627_s4 = smov 72   ;;  %s694_s22 = scalar_lea.vmem %s2659_s2, %s2268_s1 }
  0x26   : > { %v709_v1 = vsel %vm708_vm0, %v703_v0, 0.0  ;;  %v2324_v41 = vld [vmem:[%s694_s22] sm:$0xff]  ;;  %s2633_s2 = smov 112   ;;  %s2102_s22 = smov 48  }
  0x27   : > { %710 = vadd.xlane.f32.xlu0 %v709_v1  ;;  %v773_v55 = vld [vmem:[%s2660_s7] sm:$0xff] }
  0x28   : > { %v1988_v3 = vpop.eup %1987 }
  0x29   : > { %v713_v4 = vmul.f32 32.0, %v1988_v3  ;;  %vm717_vm1 = vweird.f32 %v1988_v3 }
  0x2a   : > { %v745_v14 = vld [vmem:[%s2656_s0 + $0x18] sm:$0xff]  ;;  %v744_v15 = vld [vmem:[%s2656_s0 + $0x10] sm:$0xff]  ;;  %v743_v16 = vld [vmem:[%s2656_s0 + $0x8] sm:$0xff] }
  0x2b   : > { %v714_v5 = vsub.f32 1.0, %v713_v4  ;;  %765 = vmatpush.msra.mxu0 %v745_v14  ;;  %v742_v17 = vld [vmem:[%s2656_s0] sm:$0xff] }
  0x2d   : > { %v715_v6 = vmul.f32 %v1988_v3, %v714_v5  ;;  %766 = vmatpush.msra.mxu0 %v744_v15 }
  0x2f   : > { %v716_v7 = vadd.f32 %v1988_v3, %v715_v6  ;;  %767 = vmatpush.msra.mxu0 %v743_v16 }
  0x31   : > { %v2275_v8 = vsel %vm717_vm1, %v1988_v3, %v716_v7  ;;  %768 = vmatpush.msra.mxu0 %v742_v17 }
  0x9a   : > { %v711_v9 = vpop.xlane.xlu0 %710 }
  0x9b   : > { %v719_v10 = vmul.f32 %v2275_v8, %v711_v9 }
  0x9d   : > { %v720_v11 = vsub.f32 %v703_v0, %v719_v10 }
  0x9f   : > { %v721_v12 = vmul.f32 %v720_v11, %v720_v11 }
  0xa1   : > { %v722_v13 = vsel %vm708_vm0, %v721_v12, 0.0 }
  0xa2   : > { %723 = vadd.xlane.f32.xlu0 %v722_v13 }
 0x115   : > { %v724_v18 = vpop.xlane.xlu0 %723 }
 0x116   : > { %v725_v19 = vmul.f32 %v724_v18, %v2275_v8 }
 0x118   : > { %v726_v20 = vadd.f32 1e-05, %v725_v19 }
 0x11a   : > { %1989 = vrsqrt.f32 %v726_v20  ;;  %vm733_vm3 = vweird.f32 %v726_v20 }
 0x120   : > { %v1990_v21 = vpop.eup %1989 }
 0x121   : > { %v728_v22 = vmul.f32 %v1990_v21, %v726_v20  ;;  %vm734_vm2 = vweird.f32 %v1990_v21 }
 0x122   : > { %vm735_vm4 = vmor %vm733_vm3, %vm734_vm2 }
 0x123   : > { %v729_v23 = vmul.f32 %v1990_v21, %v728_v22 }
 0x125   : > { %v730_v24 = vmul.f32 0.5, %v729_v23 }
 0x127   : > { %v731_v25 = vsub.f32 1.5, %v730_v24 }
 0x129   : > { %v732_v27 = vmul.f32 %v1990_v21, %v731_v25 }
 0x12b   : > { %v736_v29 = vsel %vm735_vm4, %v1990_v21, %v732_v27 }
 0x12c   : > { %v737_v30 = vmul.f32 %v736_v29, %v720_v11 }
 0x12e   : > { %v739_v32 = vmul.f32 %v738_v28, %v737_v30 }
 0x130   : > { %v2299_v33 = vadd.f32 %v740_v31, %v739_v32 }
 0x132   : > { %1882 = vmatmul.msk.f32.vlgmr.msra.gmra.mxu0 %vm708_vm0, %v2299_v33 }
 0x1af   : > { %v770_v35 = vpop.f32.mrf.mxu0 }
 0x1b0   : > { %v2306_v36 = vadd.f32 %v1979_v34, %v770_v35 }
 0x1b2   : > { %847 = vrot.lane.b32.xlu0 %v2306_v36, %s2628_s24  ;;  %779 = vrot.lane.b32.xlu1 %v2306_v36, %s2635_s28  ;;  %s2670_s28 = smov 80  }
 0x1ba   : > { %1051 = vrot.lane.b32.xlu0 %v2306_v36, %s2627_s4  ;;  %s2104_s4 = smov 40  }
 0x1c2   : > { %960 = vrot.lane.b32.xlu0 %v2306_v36, %s2626_s26  ;;  %s2098_s26 = smov 64  }
 0x224   : > { %v848_v37 = vpop.permute.xlu0 %847  ;;  %v780_v38 = vpop.permute.xlu1 %779 }
 0x225   : > { %1883 = vmatpush.xpose.msk.msra.mxu1 %vm781_vm5, %v780_v38 }
 0x228   : > { %1884 = vmatmul.msk.f32.vlgmr.msra.gmra.mxu1 %vm781_vm5, %v2306_v36 }
 0x22c   : > { %v1052_v39 = vpop.permute.xlu0 %1051 }
 0x234   : > { %v961_v40 = vpop.permute.xlu0 %960 }
 0x235   : > { %1891 = vmatpush.xpose.msk.msrb.mxu0 %vm781_vm5, %v961_v40  ;;  %v775_v40 = vld [vmem:[%s2660_s7 + $0x10] sm:$0xff] }
 0x2a5   : > { %v803_v42 = vpop.f32.mrf.mxu1 }
 0x2a6   : > { %v806_v43 = vmul.f32 0.35355338, %v803_v42 }
 0x2a8   : > { %v807_v44 = vadd.f32 %v806_v43, %v2324_v41  ;;  %v776_v43 = vld [vmem:[%s2660_s7 + $0x18] sm:$0xff] }
 0x2aa   : > { %v808_v45 = vsel %vm781_vm5, %v807_v44, -inf }
 0x2ab   : > { %809 = vmax.xlane.f32.xlu1 %v808_v45 }
 0x31e   : > { %v810_v46 = vpop.xlane.xlu1 %809 }
 0x31f   : > { %v811_v47 = vsub.f32 %v807_v44, %v810_v46 }
 0x321   : > { %v812_v48 = vmul.f32 1.442695, %v811_v47 }
 0x323   : > { %1991 = vpow2.f32 %v812_v48 }
 0x329   : > { %v1992_v49 = vpop.eup %1991 }
 0x32a   : > { %v814_v50 = vsel %vm781_vm5, %v1992_v49, 0.0 }
 0x32b   : > { %815 = vadd.xlane.f32.xlu2 %v814_v50 }
 0x343   : > { %819 = vrot.lane.b32.xlu2 %v2306_v36, %s2098_s26  ;;  %s2103_s26 = smov 56  }
 0x34b   : > { %845 = vrot.lane.b32.xlu2 %v2306_v36, %s2631_s29  ;;  %s2666_s29 = smov 104  }
 0x353   : > { %1049 = vrot.lane.b32.xlu2 %v2306_v36, %s2629_s30 }
 0x35b   : > { %958 = vrot.lane.b32.xlu2 %v2306_v36, %s2633_s2 }
 0x39e   : > { %v816_v51 = vpop.xlane.xlu2 %815 }
 0x39f   : > { %1993 = vrcp.f32 %v816_v51 }
 0x3a5   : > { %v1994_v52 = vpop.eup %1993 }
 0x3a6   : > { %v820_v53 = vpop.permute.xlu2 %819  ;;  %v818_v54 = vmul.f32 %v1994_v52, %v1992_v49  ;;  %v1980_v49 = vld [vmem:[%s2661_s8] ss:$0 sm:$0xff] }
 0x3a7   : > { %840 = vmatpush.msra.mxu3 %v820_v53 }
 0x3a8   : > { %1885 = vmatmul.msk.f32.vlgmr.msra.gmra.mxu3 %vm781_vm5, %v818_v54 }
 0x3a9   : > { %1886 = vmatpush.xpose.msk.msrb.mxu3 %vm781_vm5, %v848_v37  ;;  %v774_v37 = vld [vmem:[%s2660_s7 + $0x8] sm:$0xff] }
 0x3aa   : > { %930 = vmatpush.msrb.mxu1 %v774_v37 }
 0x3ac   : > { %1043 = vmatpush.msra.mxu1 %v775_v40 }
 0x3ad   : > { %953 = vmatpush.msra.mxu3 %v773_v55 }
 0x3ae   : > { %v846_v56 = vpop.permute.xlu2 %845 }
 0x3b0   : > { %1887 = vmatmul.msk.f32.vlgmr.msrb.gmra.mxu3 %vm781_vm5, %v846_v56 }
 0x3b1   : > { %1895 = vmatpush.xpose.msk.msrb.mxu3 %vm781_vm5, %v1052_v39 }
 0x3b6   : > { %v1050_v57 = vpop.permute.xlu2 %1049 }
 0x3be   : > { %v959_v58 = vpop.permute.xlu2 %958 }
 0x3bf   : > { %1892 = vmatmul.msk.f32.vlgmr.msrb.gmra.mxu0 %vm781_vm5, %v959_v58 }
 0x42b   : > { %v842_v59 = vpop.f32.mrf.mxu3 }
 0x42c   : > { %1890 = vmatmul.msk.f32.vlgmr.msra.gmra.mxu3 %vm781_vm5, %v842_v59 }
 0x433   : > { %v870_v60 = vpop.f32.mrf.mxu3 }
 0x434   : > { %v873_v61 = vmul.f32 0.35355338, %v870_v60  ;;  %1896 = vmatmul.msk.f32.vlgmr.msrb.gmra.mxu3 %vm781_vm5, %v1050_v57  ;;  %v1205_v60 = vld [vmem:[%s2609_s11 + $0x18] sm:$0xff] }
 0x435   : > { %1225 = vmatpush.msra.mxu3 %v1205_v60 }
 0x436   : > { %v874_v62 = vadd.f32 %v873_v61, %v2324_v41  ;;  %v1203_v61 = vld [vmem:[%s2609_s11 + $0x8] sm:$0xff] }
 0x438   : > { %v875_v63 = vsel %vm781_vm5, %v874_v62, -inf }
 0x439   : > { %876 = vmax.xlane.f32.xlu1 %v875_v63 }
 0x43c   : > { %v983_v0 = vpop.f32.mrf.mxu0 }
 0x43d   : > { %v986_v1 = vmul.f32 0.35355338, %v983_v0  ;;  %v1174_v0 = vld [vmem:[%s2607_s9 + $0x18] sm:$0xff] }
 0x43f   : > { %v987_v2 = vadd.f32 %v986_v1, %v2324_v41  ;;  %v1173_v1 = vld [vmem:[%s2607_s9 + $0x10] sm:$0xff] }
 0x441   : > { %v988_v3 = vsel %vm781_vm5, %v987_v2, -inf }
 0x442   : > { %989 = vmax.xlane.f32.xlu0 %v988_v3  ;;  %v1171_v3 = vld [vmem:[%s2607_s9] sm:$0xff] }
 0x4ac   : > { %v877_v4 = vpop.xlane.xlu1 %876 }
 0x4ad   : > { %v878_v5 = vsub.f32 %v874_v62, %v877_v4  ;;  %v1202_v62 = vld [vmem:[%s2609_s11] sm:$0xff] }
 0x4af   : > { %v879_v6 = vmul.f32 1.442695, %v878_v5  ;;  %v2350_v7 = vpop.f32.mrf.mxu3 }
 0x4b1   : > { %1995 = vpow2.f32 %v879_v6 }
 0x4b5   : > { %v990_v9 = vpop.xlane.xlu0 %989 }
 0x4b6   : > { %v991_v10 = vsub.f32 %v987_v2, %v990_v9  ;;  %v1172_v2 = vld [vmem:[%s2607_s9 + $0x8] sm:$0xff] }
 0x4b7   : > { %v1996_v11 = vpop.eup %1995  ;;  %v1074_v12 = vpop.f32.mrf.mxu3 }
 0x4b8   : > { %v992_v13 = vmul.f32 1.442695, %v991_v10  ;;  %v1077_v14 = vmul.f32 0.35355338, %v1074_v12  ;;  %v881_v15 = vsel %vm781_vm5, %v1996_v11, 0.0 }
 0x4b9   : > { %882 = vadd.xlane.f32.xlu1 %v881_v15 }
 0x4ba   : > { %1997 = vpow2.f32 %v992_v13  ;;  %v1078_v16 = vadd.f32 %v1077_v14, %v2324_v41  ;;  %v1167_v14 = vperm.slane %v2295_v26, 2 }
 0x4bc   : > { %v1079_v17 = vsel %vm781_vm5, %v1078_v16, -inf }
 0x4bd   : > { %1080 = vmax.xlane.f32.xlu2 %v1079_v17  ;;  %v1169_v17 = vperm.slane %v2295_v26, 3 }
 0x4c0   : > { %v1998_v18 = vpop.eup %1997 }
 0x4c1   : > { %v994_v19 = vsel %vm781_vm5, %v1998_v18, 0.0 }
 0x4c2   : > { %995 = vadd.xlane.f32.xlu1 %v994_v19 }
 0x4d5   : > { %999 = vrot.lane.b32.xlu2 %v2306_v36, %s2102_s22  ;;  %s1880_s22 = sshll.u32 %s2265_s23, 2  ;;  %s2665_s23 = smov 120  }
 0x4d6   : > { %s698_s7 = scalar_lea.vmem %s2662_s6, %s1880_s22  ;;  %s2663_s22 = smov 96  }
 0x4d7   : > { %v705_v63 = vld [vmem:[%s698_s7] sm:$0xf]  ;;  %s2667_s6 = sld [smem:[#allocation14_spill]]  ;;  %s2669_s7 = smov 72  }
 0x4db   : > { %886 = vrot.lane.b32.xlu1 %v2306_v36, %s2103_s26  ;;  %s1925_s26 = sshll.u32 %s2236_s3, 3 }
 0x4dd   : > { %s702_s0 = scalar_lea.vmem %s2667_s6, %s2268_s1 }
 0x4e3   : > { %1090 = vrot.lane.b32.xlu1 %v2306_v36, %s2104_s4  ;;  %s2664_s4 = smov 112  }
 0x52c   : > { %v883_v24 = vpop.xlane.xlu1 %882 }
 0x530   : > { %v1081_v20 = vpop.xlane.xlu2 %1080 }
 0x531   : > { %v1082_v21 = vsub.f32 %v1078_v16, %v1081_v20  ;;  %v1981_v20 = vld [vmem:[%s2610_s12] ss:$0 sm:$0xff] }
 0x533   : > { %v1083_v22 = vmul.f32 1.442695, %v1082_v21 }
 0x535   : > { %1999 = vpow2.f32 %v1083_v22  ;;  %v996_v27 = vpop.xlane.xlu1 %995 }
 0x536   : > { %2001 = vrcp.f32 %v883_v24 }
 0x537   : > { %2003 = vrcp.f32 %v996_v27 }
 0x538   : > { %v1000_v31 = vpop.permute.xlu2 %999 }
 0x53b   : > { %v2000_v23 = vpop.eup %1999 }
 0x53c   : > { %v1085_v25 = vsel %vm781_vm5, %v2000_v23, 0.0  ;;  %v2002_v28 = vpop.eup %2001 }
 0x53d   : > { %1086 = vadd.xlane.f32.xlu0 %v1085_v25  ;;  %v885_v30 = vmul.f32 %v2002_v28, %v1996_v11  ;;  %v2004_v32 = vpop.eup %2003  ;;  %v706_v28 = vld [vmem:[%s702_s0] sm:$0xff] }
 0x53e   : > { %v998_v35 = vmul.f32 %v2004_v32, %v1998_v18 }
 0x54d   : > { %v887_v29 = vpop.permute.xlu1 %886 }
 0x54e   : > { %907 = vmatpush.msra.mxu2 %v887_v29 }
 0x54f   : > { %1888 = vmatmul.msk.f32.vlgmr.msra.gmra.mxu2 %vm781_vm5, %v885_v30 }
 0x550   : > { %1020 = vmatpush.msrb.mxu2 %v1000_v31 }
 0x552   : > { %1134 = vmatpush.msra.mxu2 %v776_v43 }
 0x555   : > { %v1091_v34 = vpop.permute.xlu1 %1090 }
 0x556   : > { %1111 = vmatpush.msra.mxu0 %v1091_v34 }
 0x557   : > { %1893 = vmatmul.msk.f32.vlgmr.msrb.gmra.mxu2 %vm781_vm5, %v998_v35 }
 0x5b0   : > { %v1087_v36 = vpop.xlane.xlu0 %1086 }
 0x5b1   : > { %2005 = vrcp.f32 %v1087_v36 }
 0x5b7   : > { %v2006_v38 = vpop.eup %2005 }
 0x5b8   : > { %v1089_v39 = vmul.f32 %v2006_v38, %v2000_v23  ;;  %v1982_v23 = vld [vmem:[%s2608_s10] ss:$0 sm:$0xff] }
 0x5ba   : > { %1897 = vmatmul.msk.f32.vlgmr.msra.gmra.mxu0 %vm781_vm5, %v1089_v39  ;;  %v1233_v39 = vld [vmem:[%s2611_s13] sm:$0xff] }
 0x5d2   : > { %v909_v41 = vpop.f32.mrf.mxu2 }
 0x5d3   : > { %1889 = vmatmul.msk.f32.vlgmr.msrb.gmra.mxu1 %vm781_vm5, %v909_v41 }
 0x5d4   : > { %1194 = vmatpush.msrb.mxu1 %v1174_v0 }
 0x5d6   : > { %1195 = vmatpush.msrb.mxu1 %v1173_v1 }
 0x5d8   : > { %1196 = vmatpush.msrb.mxu1 %v1172_v2 }
 0x5da   : > { %v1022_v42 = vpop.f32.mrf.mxu2  ;;  %1197 = vmatpush.msrb.mxu1 %v1171_v3 }
 0x5db   : > { %1894 = vmatmul.msk.f32.vlgmr.msra.gmra.mxu1 %vm781_vm5, %v1022_v42 }
 0x637   : > { %v1113_v44 = vpop.f32.mrf.mxu0 }
 0x638   : > { %1898 = vmatmul.msk.f32.vlgmr.msra.gmra.mxu2 %vm781_vm5, %v1113_v44 }
 0x650   : > { %v932_v45 = vpop.f32.mrf.mxu1 }
 0x651   : > { %v956_v47 = vadd.f32 %v2350_v7, %v932_v45 }
 0x658   : > { %v1045_v46 = vpop.f32.mrf.mxu1 }
 0x659   : > { %v1048_v48 = vadd.f32 %v1045_v46, %v956_v47 }
 0x6bb   : > { %v1136_v50 = vpop.f32.mrf.mxu2 }
 0x6bc   : > { %v1139_v51 = vadd.f32 %v1136_v50, %v1048_v48 }
 0x6be   : > { %v1143_v52 = vadd.f32 %v1980_v49, %v1139_v51 }
 0x6c0   : > { %v1144_v53 = vadd.f32 %v1143_v52, %v2299_v33  ;;  %v1204_v33 = vld [vmem:[%s2609_s11 + $0x10] sm:$0xff] }
 0x6c1   : > { %1226 = vmatpush.msra.mxu3 %v1204_v33 }
 0x6c2   : > { %v1145_v54 = vsel %vm708_vm0, %v1144_v53, 0.0 }
 0x6c3   : > { %1146 = vadd.xlane.f32.xlu0 %v1145_v54  ;;  %1227 = vmatpush.msra.mxu3 %v1203_v61 }
 0x6c5   : > { %1228 = vmatpush.msra.mxu3 %v1202_v62 }
 0x6c6   : > { %1900 = vmatmul.msk.f32.vlgmr.msra.gmra.mxu3 %vm708_vm0, %v705_v63 }
 0x736   : > { %v1147_v55 = vpop.xlane.xlu0 %1146 }
 0x737   : > { %v1148_v56 = vmul.f32 %v1147_v55, %v2275_v8 }
 0x739   : > { %v1149_v57 = vsub.f32 %v1144_v53, %v1148_v56 }
 0x73b   : > { %v1150_v58 = vmul.f32 %v1149_v57, %v1149_v57 }
 0x73d   : > { %v1151_v59 = vsel %vm708_vm0, %v1150_v58, 0.0 }
 0x73e   : > { %1152 = vadd.xlane.f32.xlu1 %v1151_v59 }
 0x749   : > { %v1230_v21 = vpop.f32.mrf.mxu3 }
 0x74a   : > { %v2422_v22 = vadd.f32 %v1981_v20, %v1230_v21  ;;  %v1234_v20 = vld [vmem:[%s2611_s13 + $0x8] sm:$0xff] }
 0x74c   : > { %1278 = vrot.lane.b32.xlu2 %v2422_v22, %s2663_s22  ;;  %1901 = vmatpush.xpose.msk.msrb.mxu0 %vm781_vm5, %v2422_v22 }
 0x750   : > { %1392 = vmatpush.msra.mxu0 %v1234_v20 }
 0x7a6   : > { %v1279_v27 = vpop.permute.xlu2 %1278 }
 0x7a7   : > { %1903 = vmatpush.msk.msrb.mxu2 %vm1283_vm9, %v1279_v27 }
 0x7a9   : > { %1415 = vmatpush.msra.mxu2 %v1233_v39  ;;  %v1983_v39 = vld [vmem:[%s2612_s14] ss:$0 sm:$0xff] }
 0x7b1   : > { %v1153_v4 = vpop.xlane.xlu1 %1152 }
 0x7b2   : > { %v1154_v5 = vmul.f32 %v1153_v4, %v2275_v8 }
 0x7b4   : > { %v1155_v6 = vadd.f32 1e-05, %v1154_v5 }
 0x7b6   : > { %2007 = vrsqrt.f32 %v1155_v6  ;;  %vm1162_vm7 = vweird.f32 %v1155_v6 }
 0x7bc   : > { %v2008_v7 = vpop.eup %2007 }
 0x7bd   : > { %v1157_v9 = vmul.f32 %v2008_v7, %v1155_v6  ;;  %vm1163_vm6 = vweird.f32 %v2008_v7 }
 0x7be   : > { %vm1164_vm8 = vmor %vm1162_vm7, %vm1163_vm6 }
 0x7bf   : > { %v1158_v10 = vmul.f32 %v2008_v7, %v1157_v9 }
 0x7c1   : > { %v1159_v11 = vmul.f32 0.5, %v1158_v10 }
 0x7c3   : > { %v1160_v12 = vsub.f32 1.5, %v1159_v11 }
 0x7c5   : > { %v1161_v13 = vmul.f32 %v2008_v7, %v1160_v12 }
 0x7c7   : > { %v1165_v15 = vsel %vm1164_vm8, %v2008_v7, %v1161_v13 }
 0x7c8   : > { %v1166_v16 = vmul.f32 %v1165_v15, %v1149_v57 }
 0x7ca   : > { %v1168_v18 = vmul.f32 %v1167_v14, %v1166_v16 }
 0x7cc   : > { %v2415_v19 = vadd.f32 %v1169_v17, %v1168_v18 }
 0x7ce   : > { %1899 = vmatmul.msk.f32.vlgmr.msrb.gmra.mxu1 %vm708_vm0, %v2415_v19 }
 0x84b   : > { %v1199_v24 = vpop.f32.mrf.mxu1 }
 0x84c   : > { %v1200_v25 = vadd.f32 %v1982_v23, %v1199_v24 }
 0x84e   : > { %1420 = vrot.lane.b32.xlu1 %v1200_v25, %s2664_s4  ;;  %1306 = vrot.lane.b32.xlu2 %v1200_v25, %s2665_s23 }
 0x84f   : > { %1902 = vmatmul.msk.f32.vlgmr.msrb.gmra.mxu0 %vm781_vm5, %v1200_v25 }
 0x856   : > { %1514 = vrot.lane.b32.xlu2 %v2422_v22, %s2666_s29 }
 0x85e   : > { %1512 = vrot.lane.b32.xlu2 %v1200_v25, %s2666_s29 }
 0x8a8   : > { %v1307_v40 = vpop.permute.xlu2 %1306 }
 0x8b0   : > { %v1515_v44 = vpop.permute.xlu2 %1514 }
 0x8b8   : > { %v1513_v50 = vpop.permute.xlu2 %1512 }
 0x8c0   : > { %v1421_v47 = vpop.permute.xlu1 %1420 }
 0x8cc   : > { %v1261_v29 = vpop.f32.mrf.mxu0 }
 0x8cd   : > { %v1264_v30 = vmul.f32 0.35355338, %v1261_v29 }
 0x8cf   : > { %v1265_v31 = vadd.f32 %v1264_v30, %v706_v28 }
 0x8d1   : > { %v1267_v32 = vsel %vm1266_vm10, %v1265_v31, -inf }
 0x8d2   : > { %1268 = vmax.xlane.f32.xlu0 %v1267_v32 }
 0x945   : > { %v1269_v34 = vpop.xlane.xlu0 %1268 }
 0x946   : > { %v1270_v35 = vsub.f32 %v1265_v31, %v1269_v34  ;;  %v1235_v31 = vld [vmem:[%s2611_s13 + $0x10] sm:$0xff] }
 0x947   : > { %1506 = vmatpush.msrb.mxu0 %v1235_v31  ;;  %v1730_v31 = vld [vmem:[%s2617_s19] sm:$0xff] }
 0x948   : > { %v1271_v36 = vmul.f32 1.442695, %v1270_v35 }
 0x94a   : > { %2009 = vpow2.f32 %v1271_v36 }
 0x950   : > { %v2010_v37 = vpop.eup %2009 }
 0x951   : > { %v1273_v38 = vsel %vm1266_vm10, %v2010_v37, 0.0 }
 0x952   : > { %1274 = vadd.xlane.f32.xlu0 %v1273_v38 }
 0x966   : > { %1308 = vrot.lane.b32.xlu0 %v2422_v22, %s2665_s23  ;;  %s1773_s23 = scalar_lea.hbm %s2619_s21, %s1925_s26 }
 0x967   : > { %s1777_s0 = sshll.u32 %s1773_s23, 4  ;;  %s1778_s0 = int_to_ptr.hbm [resolvable:$true] %s1777_s0 }
 0x968   : > { %s2043_s3 = sshra.s32 %s1778_s0, 4  ;;  %s2044_s3 = int_to_ptr.hbm [resolvable:$true] %s2043_s3 }
 0x969   : > { %s2045_s8 = scalar_lea.hbm %s2044_s3, 8  ;;  %p2050_p0 = scmp.lt.s32.totalorder %s2044_s3, %s2619_s21 }
 0x96a   : > { %p2046_p11 = scmp.ne.s32.totalorder %s2044_s3, %s2045_s8 }
 0x96c   : > { %p2047_p12 = pnand %p2046_p11, %p2253_p5 }
 0x96e   : > { %1422 = vrot.lane.b32.xlu0 %v2422_v22, %s2664_s4  ;;  %p2048_p13 = pneg %p2047_p12 }
 0x9c5   : > { %v1275_v41 = vpop.xlane.xlu0 %1274 }
 0x9c6   : > { %2011 = vrcp.f32 %v1275_v41 }
 0x9cc   : > { %v2012_v42 = vpop.eup %2011 }
 0x9cd   : > { %v1277_v43 = vmul.f32 %v2012_v42, %v2010_v37 }
 0x9cf   : > { %1904 = vmatmul.msk.f32.vlgmr.msrb.gmra.mxu2 %vm1266_vm10, %v1277_v43 }
 0x9d0   : > { %1916 = vmatpush.xpose.msk.msrb.mxu2 %vm781_vm5, %v1515_v44 }
 0x9d8   : > { %v1309_v45 = vpop.permute.xlu0 %1308 }
 0x9d9   : > { %1905 = vmatpush.xpose.msk.msra.mxu1 %vm781_vm5, %v1309_v45 }
 0x9dc   : > { %1906 = vmatmul.msk.f32.vlgmr.msra.gmra.mxu1 %vm781_vm5, %v1307_v40 }
 0x9e0   : > { %v1423_v46 = vpop.permute.xlu0 %1422 }
 0x9e1   : > { %1911 = vmatpush.xpose.msk.msrb.mxu1 %vm781_vm5, %v1423_v46 }
 0x9e4   : > { %1912 = vmatmul.msk.f32.vlgmr.msrb.gmra.mxu1 %vm781_vm5, %v1421_v47 }
 0xa52   : > { %v1303_v48 = vpop.f32.mrf.mxu2 }
 0xa53   : > { %1910 = vmatmul.msk.f32.vlgmr.msra.gmra.mxu2 %vm781_vm5, %v1303_v48 }
 0xa59   : > { %v1331_v49 = vpop.f32.mrf.mxu1 }
 0xa5a   : > { %v1334_v51 = vmul.f32 0.35355338, %v1331_v49 }
 0xa5b   : > { %1917 = vmatmul.msk.f32.vlgmr.msrb.gmra.mxu2 %vm781_vm5, %v1513_v50  ;;  %v1638_v50 = vld [vmem:[%s2613_s15 + $0x18] sm:$0xff] }
 0xa5c   : > { %v1335_v52 = vadd.f32 %v1334_v51, %v706_v28  ;;  %v1636_v51 = vld [vmem:[%s2613_s15 + $0x8] sm:$0xff] }
 0xa5e   : > { %v1336_v53 = vsel %vm1266_vm10, %v1335_v52, -inf }
 0xa5f   : > { %1337 = vmax.xlane.f32.xlu2 %v1336_v53  ;;  %v1674_v53 = vld [vmem:[%s2615_s17 + $0x38] sm:$0xff] }
 0xa60   : > { %1691 = vmatpush.msra.mxu2 %v1674_v53 }
 0xa61   : > { %v1445_v54 = vpop.f32.mrf.mxu1 }
 0xa62   : > { %v1448_v55 = vmul.f32 0.35355338, %v1445_v54  ;;  %v1673_v54 = vld [vmem:[%s2615_s17 + $0x30] sm:$0xff] }
 0xa63   : > { %1692 = vmatpush.msra.mxu2 %v1673_v54 }
 0xa64   : > { %v1449_v56 = vadd.f32 %v1448_v55, %v706_v28  ;;  %v1672_v55 = vld [vmem:[%s2615_s17 + $0x28] sm:$0xff] }
 0xa65   : > { %1693 = vmatpush.msra.mxu2 %v1672_v55 }
 0xa66   : > { %v1450_v57 = vsel %vm1266_vm10, %v1449_v56, -inf }
 0xa67   : > { %1451 = vmax.xlane.f32.xlu0 %v1450_v57 }
 0xad2   : > { %v1338_v58 = vpop.xlane.xlu2 %1337 }
 0xad3   : > { %v1339_v59 = vsub.f32 %v1335_v52, %v1338_v58  ;;  %v1635_v52 = vld [vmem:[%s2613_s15] sm:$0xff] }
 0xad4   : > { %v1671_v58 = vld [vmem:[%s2615_s17 + $0x20] sm:$0xff] }
 0xad5   : > { %v1340_v60 = vmul.f32 1.442695, %v1339_v59  ;;  %1694 = vmatpush.msra.mxu2 %v1671_v58 }
 0xad6   : > { %v1417_v33 = vpop.f32.mrf.mxu2 }
 0xad7   : > { %2013 = vpow2.f32 %v1340_v60  ;;  %v1670_v60 = vld [vmem:[%s2615_s17 + $0x18] sm:$0xff] }
 0xad8   : > { %1695 = vmatpush.msra.mxu2 %v1670_v60 }
 0xada   : > { %v1452_v61 = vpop.xlane.xlu0 %1451 }
 0xadb   : > { %v1453_v62 = vsub.f32 %v1449_v56, %v1452_v61 }
 0xadd   : > { %v2014_v63 = vpop.eup %2013  ;;  %v1454_v0 = vmul.f32 1.442695, %v1453_v62 }
 0xade   : > { %v1537_v1 = vpop.f32.mrf.mxu2  ;;  %v1342_v2 = vsel %vm1266_vm10, %v2014_v63, 0.0 }
 0xadf   : > { %2015 = vpow2.f32 %v1454_v0  ;;  %v1540_v3 = vmul.f32 0.35355338, %v1537_v1  ;;  %1343 = vadd.xlane.f32.xlu2 %v1342_v2  ;;  %v1631_v2 = vperm.slane %v2295_v26, 4 }
 0xae1   : > { %v1541_v4 = vadd.f32 %v1540_v3, %v706_v28 }
 0xae3   : > { %v1542_v5 = vsel %vm1266_vm10, %v1541_v4, -inf }
 0xae4   : > { %1543 = vmax.xlane.f32.xlu1 %v1542_v5  ;;  %v1633_v5 = vperm.slane %v2295_v26, 5 }
 0xae5   : > { %v2016_v6 = vpop.eup %2015 }
 0xae6   : > { %v1456_v7 = vsel %vm1266_vm10, %v2016_v6, 0.0 }
 0xae7   : > { %1457 = vadd.xlane.f32.xlu0 %v1456_v7 }
 0xaf7   : > { %1347 = vrot.lane.b32.xlu2 %v2422_v22, %s2668_s27 }
 0xafd   : > { %1553 = vrot.lane.b32.xlu1 %v2422_v22, %s2669_s7 }
 0xb52   : > { %v1344_v9 = vpop.xlane.xlu2 %1343 }
 0xb53   : > { %2017 = vrcp.f32 %v1344_v9  ;;  %v1669_v9 = vld [vmem:[%s2615_s17 + $0x10] sm:$0xff] }
 0xb54   : > { %1696 = vmatpush.msra.mxu2 %v1669_v9 }
 0xb57   : > { %v1544_v10 = vpop.xlane.xlu1 %1543 }
 0xb58   : > { %v1545_v11 = vsub.f32 %v1541_v4, %v1544_v10  ;;  %v1668_v10 = vld [vmem:[%s2615_s17 + $0x8] sm:$0xff] }
 0xb59   : > { %v2018_v12 = vpop.eup %2017  ;;  %1697 = vmatpush.msra.mxu2 %v1668_v10 }
 0xb5a   : > { %v1346_v13 = vmul.f32 %v2018_v12, %v2014_v63  ;;  %v1546_v14 = vmul.f32 1.442695, %v1545_v11  ;;  %v1348_v15 = vpop.permute.xlu2 %1347  ;;  %v1458_v21 = vpop.xlane.xlu0 %1457  ;;  %v1667_v11 = vld [vmem:[%s2615_s17] sm:$0xff] }
 0xb5b   : > { %1907 = vmatpush.msk.msrb.mxu3 %vm1283_vm9, %v1348_v15  ;;  %1698 = vmatpush.msra.mxu2 %v1667_v11  ;;  %v1984_v12 = vld [vmem:[%s2614_s16] ss:$0 sm:$0xff] }
 0xb5c   : > { %2019 = vpow2.f32 %v1546_v14  ;;  %1908 = vmatmul.msk.f32.vlgmr.msrb.gmra.mxu3 %vm1266_vm10, %v1346_v13 }
 0xb62   : > { %v2020_v16 = vpop.eup %2019 }
 0xb63   : > { %v1548_v17 = vsel %vm1266_vm10, %v2020_v16, 0.0 }
 0xb64   : > { %1549 = vadd.xlane.f32.xlu0 %v1548_v17 }
 0xb6f   : > { %v1554_v18 = vpop.permute.xlu1 %1553 }
 0xb70   : > { %1918 = vmatpush.msk.msra.mxu1 %vm1283_vm9, %v1554_v18 }
 0xb78   : > { %1461 = vrot.lane.b32.xlu0 %v2422_v22, %s2670_s28  ;;  %v1236_v22 = vld [vmem:[%s2611_s13 + $0x18] sm:$0xff]  ;;  %s684_s28 = sand.u32 1, %s2083_s25  }
 0xb79   : > { %s1877_s22 = sshll.u32 %s684_s28, 3  ;;  %s1763_s1 = scalar_lea.sflag [#allocation3], %s684_s28 }
 0xb7a   : > { %s686_s30 = scalar_lea.vmem [#allocation2], %s1877_s22  ;;  %s2049_s22 = scalar_lea.hbm %s2619_s21, 16 }
 0xb7b   : > { %s1775_s6 = sshll.u32 %s686_s30, 4  ;;  %p2051_p1 = scmp.lt.s32.totalorder %s2049_s22, %s2045_s8  ;;  %s1776_s6 = int_to_ptr.vmem [resolvable:$true] %s1775_s6 }
 0xb7d   : > { %p2052_p2 = por %p2051_p1, %p2050_p0 }
 0xb7f   : > { %p2053_p3 = pnand %p2052_p2, %p2048_p13 }
 0xbd7   : > { %v1550_v23 = vpop.xlane.xlu0 %1549 }
 0xbd8   : > { %2021 = vrcp.f32 %v1550_v23 }
 0xbd9   : > { %2023 = vrcp.f32 %v1458_v21 }
 0xbde   : > { %v2022_v24 = vpop.eup %2021 }
 0xbdf   : > { %v1552_v25 = vmul.f32 %v2022_v24, %v2020_v16  ;;  %v1371_v27 = vpop.f32.mrf.mxu3  ;;  %v2024_v28 = vpop.eup %2023  ;;  %v1985_v16 = vld [vmem:[%s2616_s18] ss:$0 sm:$0xff] }
 0xbe0   : > { %1909 = vmatmul.msk.f32.vlgmr.msra.gmra.mxu0 %vm781_vm5, %v1371_v27  ;;  %v1460_v29 = vmul.f32 %v2024_v28, %v2016_v6 }
 0xbe1   : > { %1919 = vmatmul.msk.f32.vlgmr.msra.gmra.mxu1 %vm1266_vm10, %v1552_v25  ;;  %1658 = vmatpush.msra.mxu0 %v1638_v50 }
 0xbea   : > { %v1462_v30 = vpop.permute.xlu0 %1461 }
 0xbeb   : > { %1913 = vmatpush.msk.msra.mxu3 %vm1283_vm9, %v1462_v30  ;;  %v1732_v30 = vld [vmem:[%s2617_s19 + $0x10] sm:$0xff] }
 0xbec   : > { %1914 = vmatmul.msk.f32.vlgmr.msra.gmra.mxu3 %vm1266_vm10, %v1460_v29  ;;  %v1733_v29 = vld [vmem:[%s2617_s19 + $0x18] sm:$0xff] }
 0xbed   : > { %1598 = vmatpush.msrb.mxu3 %v1236_v22  ;;  %1753 = vmatpush.msrb.mxu1 %v1733_v29  ;;  %v1731_v22 = vld [vmem:[%s2617_s19 + $0x8] sm:$0xff] }
 0xbef   : > { %1754 = vmatpush.msrb.mxu1 %v1732_v30 }
 0xbf1   : > { %1755 = vmatpush.msrb.mxu1 %v1731_v22 }
 0xbf3   : > { %1756 = vmatpush.msrb.mxu1 %v1730_v31 }
 0xc5d   : > { %v1394_v35 = vpop.f32.mrf.mxu0 }
 0xc5e   : > { %v1577_v32 = vpop.f32.mrf.mxu1  ;;  %v1418_v36 = vadd.f32 %v1417_v33, %v1394_v35 }
 0xc5f   : > { %1920 = vmatmul.msk.f32.vlgmr.msrb.gmra.mxu3 %vm781_vm5, %v1577_v32 }
 0xc6f   : > { %v1485_v34 = vpop.f32.mrf.mxu3 }
 0xc70   : > { %1915 = vmatmul.msk.f32.vlgmr.msrb.gmra.mxu0 %vm781_vm5, %v1485_v34 }
 0xce2   : > { %v1600_v40 = vpop.f32.mrf.mxu3 }
 0xced   : > { %v1508_v37 = vpop.f32.mrf.mxu0 }
 0xcee   : > { %v1511_v38 = vadd.f32 %v1508_v37, %v1418_v36 }
 0xcf0   : > { %v1603_v41 = vadd.f32 %v1600_v40, %v1511_v38 }
 0xcf2   : > { %v1607_v42 = vadd.f32 %v1983_v39, %v1603_v41 }
 0xcf4   : > { %v1608_v43 = vadd.f32 %v1607_v42, %v2415_v19  ;;  %v1637_v19 = vld [vmem:[%s2613_s15 + $0x10] sm:$0xff]  ;;  %v1726_v42 = vperm.slane %v2295_v26, 6 }
 0xcf5   : > { %1659 = vmatpush.msra.mxu0 %v1637_v19 }
 0xcf6   : > { %v1609_v44 = vsel %vm708_vm0, %v1608_v43, 0.0 }
 0xcf7   : > { %1610 = vadd.xlane.f32.xlu2 %v1609_v44  ;;  %1660 = vmatpush.msra.mxu0 %v1636_v51 }
 0xcf9   : > { %1661 = vmatpush.msra.mxu0 %v1635_v52 }
 0xd6a   : > { %v1611_v45 = vpop.xlane.xlu2 %1610 }
 0xd6b   : > { %v1612_v46 = vmul.f32 %v1611_v45, %v2275_v8  ;;  %v1728_v45 = vperm.slane %v2295_v26, 7 }
 0xd6d   : > { %v1613_v47 = vsub.f32 %v1608_v43, %v1612_v46 }
 0xd6f   : > { %v1614_v48 = vmul.f32 %v1613_v47, %v1613_v47 }
 0xd71   : > { %v1615_v49 = vsel %vm708_vm0, %v1614_v48, 0.0 }
 0xd72   : > { %1616 = vadd.xlane.f32.xlu0 %v1615_v49 }
 0xde5   : > { %v1617_v56 = vpop.xlane.xlu0 %1616 }
 0xde6   : > { %v1618_v57 = vmul.f32 %v1617_v56, %v2275_v8 }
 0xde8   : > { %v1619_v59 = vadd.f32 1e-05, %v1618_v57 }
 0xdea   : > { %2025 = vrsqrt.f32 %v1619_v59  ;;  %vm1626_vm12 = vweird.f32 %v1619_v59 }
 0xdf0   : > { %v2026_v33 = vpop.eup %2025 }
 0xdf1   : > { %v1621_v61 = vmul.f32 %v2026_v33, %v1619_v59  ;;  %vm1627_vm11 = vweird.f32 %v2026_v33 }
 0xdf2   : > { %vm1628_vm13 = vmor %vm1626_vm12, %vm1627_vm11 }
 0xdf3   : > { %v1622_v62 = vmul.f32 %v2026_v33, %v1621_v61 }
 0xdf5   : > { %v1623_v63 = vmul.f32 0.5, %v1622_v62 }
 0xdf7   : > { %v1624_v0 = vsub.f32 1.5, %v1623_v63 }
 0xdf9   : > { %v1625_v1 = vmul.f32 %v2026_v33, %v1624_v0 }
 0xdfb   : > { %v1629_v3 = vsel %vm1628_vm13, %v2026_v33, %v1625_v1 }
 0xdfc   : > { %v1630_v4 = vmul.f32 %v1629_v3, %v1613_v47  ;;  %v1986_v47 = vld [vmem:[%s2618_s20] ss:$0 sm:$0xff] }
 0xdfe   : > { %v1632_v6 = vmul.f32 %v1631_v2, %v1630_v4 }
 0xe00   : > { %v1634_v7 = vadd.f32 %v1633_v5, %v1632_v6 }
 0xe02   : > { %1921 = vmatmul.msk.f32.vlgmr.msra.gmra.mxu0 %vm708_vm0, %v1634_v7 }
 0xe7f   : > { %v1663_v13 = vpop.f32.mrf.mxu0 }
 0xe80   : > { %v1664_v14 = vadd.f32 %v1984_v12, %v1663_v13 }
 0xe82   : > { %v1666_v15 = vmax.f32 %v1664_v14, 0.0 }
 0xe84   : > { %1922 = vmatmul.msk.f32.vlgmr.msra.gmra.mxu2 %vm1679_vm14, %v1666_v15 }
 0xf07   : > { %v1700_v17 = vpop.f32.mrf.mxu2 }
 0xf08   : > { %v1701_v18 = vadd.f32 %v1985_v16, %v1700_v17 }
 0xf0a   : > { %v1703_v20 = vadd.f32 %v1701_v18, %v1634_v7 }
 0xf0c   : > { %v1704_v21 = vsel %vm708_vm0, %v1703_v20, 0.0 }
 0xf0d   : > { %1705 = vadd.xlane.f32.xlu1 %v1704_v21 }
 0xf80   : > { %v1706_v23 = vpop.xlane.xlu1 %1705 }
 0xf81   : > { %v1707_v24 = vmul.f32 %v1706_v23, %v2275_v8 }
 0xf83   : > { %v1708_v25 = vsub.f32 %v1703_v20, %v1707_v24 }
 0xf85   : > { %v1709_v27 = vmul.f32 %v1708_v25, %v1708_v25 }
 0xf87   : > { %v1710_v28 = vsel %vm708_vm0, %v1709_v27, 0.0 }
 0xf88   : > { %1711 = vadd.xlane.f32.xlu2 %v1710_v28 }
 0xffb   : > { %v1712_v32 = vpop.xlane.xlu2 %1711 }
 0xffc   : > { %v1713_v34 = vmul.f32 %v1712_v32, %v2275_v8 }
 0xffe   : > { %v1714_v35 = vadd.f32 1e-05, %v1713_v34 }
0x1000   : > { %2027 = vrsqrt.f32 %v1714_v35  ;;  %vm1721_vm1 = vweird.f32 %v1714_v35 }
0x1006   : > { %v2028_v36 = vpop.eup %2027 }
0x1007   : > { %v1716_v37 = vmul.f32 %v2028_v36, %v1714_v35  ;;  %vm1722_vm15 = vweird.f32 %v2028_v36 }
0x1008   : > { %vm1723_vm2 = vmor %vm1721_vm1, %vm1722_vm15 }
0x1009   : > { %v1717_v38 = vmul.f32 %v2028_v36, %v1716_v37 }
0x100b   : > { %v1718_v39 = vmul.f32 0.5, %v1717_v38 }
0x100d   : > { %v1719_v40 = vsub.f32 1.5, %v1718_v39 }
0x100f   : > { %v1720_v41 = vmul.f32 %v2028_v36, %v1719_v40 }
0x1011   : > { %v1724_v43 = vsel %vm1723_vm2, %v2028_v36, %v1720_v41 }
0x1012   : > { %v1725_v44 = vmul.f32 %v1724_v43, %v1708_v25 }
0x1014   : > { %v1727_v8 = vmul.f32 %v1726_v42, %v1725_v44 }
0x1016   : > { %v1729_v46 = vadd.f32 %v1728_v45, %v1727_v8 }
0x1018   : > { %1923 = vmatmul.msk.f32.vlgmr.msrb.gmra.mxu1 %vm708_vm0, %v1729_v46 }
0x1095   : > { %v1758_v26 = vpop.f32.mrf.mxu1 }
0x1096   : > { %v1759_v48 = vadd.f32 %v1986_v47, %v1758_v26 }
0x1098   : > { %1761 = vst.msk [vmem:[%s686_s30] sm:$0xff] %vm1679_vm14, %v1759_v48 }
0x1099   : > { %2056 = shalt.err (!%p2053_p3)
}
0x109a   : > { %1928 = dma.vmem_to_hbm [thread:$0]  (%p2253_p5), %s1776_s6, 128, %s1778_s0, %s1763_s1  }
0x109b PF: > { %s2671_s28 = sld [smem:[#allocation7_spill]] }
0x109c   : > { %s2672_s4 = sld [smem:[#allocation5_spill]] }
0x10a1   : > { %p1934_p4 = scmp.ge.s32.totalorder %s2671_s28, 2 }
0x10a2   : > { %s1789_s29 = sand.u32 1, %s2672_s4  }
0x10a3   : > { %p1931_p7 = pnand %p1934_p4, %p2257_p6  ;;  %s1790_s2 = scalar_lea.sflag [#allocation3], %s1789_s29 }
0x10a5   : > { %p1932_p8 = pneg %p1931_p7 }
0x10a7   : > { %2074 = dma.done.wait (%p1932_p8), %s1790_s2, 128  }
0x10a8   : > { %2076 = vsyncadd (%p1932_p8), %s1790_s2, 4294967168  ;;  %s2674_s27 = sld [smem:[#allocation8_spill]]  ;;  %s2677_s2 = smov %s2083_s25 }
0x10a9   : > { %s2675_s30 = sld [smem:[#allocation6_spill]] }
0x10aa   : > { %s2676_s26 = sld [smem:[#allocation9_spill]] }
0x10ae   : > { %p31_p9 = scmp.ge.s32.totalorder %s2674_s27, 4  }
0x10af   : > { %s2678_s25 = smov %s2675_s30 }
0x10b0   :  { %33 = sbr.rel (!%p31_p9) target bundleno = 13 (0xd), region = 148 }
0x10b5   :  { %1796 = vsyncpa [#allocation3], 1 }
0x10b6   :  { %1798 = vsyncpa [#allocation3 + $0x1], 1 }

</bundles_post_ra>
